<compile_context>
chip_gen: v7x
topology: tpu7x:2x2x1
jax: 0.10.0
libtpu: 0.0.40
codegen_flags: <defaults>
</compile_context>

<pallas_src>
import functools

import jax
import jax.numpy as jnp
from jax import lax
from jax.experimental import pallas as pl
from jax.experimental.pallas import tpu as pltpu


def _bert_embeddings_kernel(
    word_ids_ref,                       # SMEM scalar-prefetch: flat word ids [Np]
    word_hbm,                           # word-embedding table in HBM (pl.ANY)
    pos_ids_ref, type_ids_ref,          # VMEM int32 blocks [TB, 1]
    pos_tab_ref, type_tab_ref,          # VMEM-resident f32 tables [MP, H], [TV, H]
    gamma_ref, beta_ref,                # VMEM-resident f32 LayerNorm params [1, H]
    out_ref,                            # output tile [TB, H]
    wbuf, sem,                          # scratch: VMEM [2*CHUNK, H], DMA sems (2,)
    *, tb, chunk, eps):
  base = pl.program_id(0) * tb
  nchunk = tb // chunk
  u_steps = chunk // 8                  # chunk is always a multiple of 8

  def issue(c, slot):
    """Start one word-row gather DMA per token of chunk `c` into buffer `slot`."""
    cbase = base + c * chunk
    dst0 = slot * chunk
    def body(j, carry):
      i0 = j * 8
      for u in range(8):                # manual unroll (LLO visibility)
        i = i0 + u
        idx = word_ids_ref[cbase + i]
        pltpu.make_async_copy(word_hbm.at[idx], wbuf.at[dst0 + i],
                              sem.at[slot]).start()
      return carry
    lax.fori_loop(0, u_steps, body, 0)

  def wait_chunk(slot):
    # Every issued copy moves exactly one word-table row (H * itemsize bytes),
    # so `chunk` same-sized dummy-descriptor waits drain the DMA semaphore
    # exactly.  NOTE: this relies on all row copies having identical byte size.
    def body(j, carry):
      for _ in range(8):
        pltpu.make_async_copy(word_hbm.at[0], wbuf.at[0], sem.at[slot]).wait()
      return carry
    lax.fori_loop(0, u_steps, body, 0)

  # Prime the pipeline with chunk 0 of this tile.
  issue(0, 0)

  gamma = gamma_ref[...]                # already f32 (casts hoisted to wrapper)
  beta = beta_ref[...]
  pos_tab = pos_tab_ref[...]
  type_tab = type_tab_ref[...]
  mp = pos_tab.shape[0]
  tv = type_tab.shape[0]

  def process(c, carry):
    slot = c % 2
    # Prefetch chunk c+1 *before* blocking on chunk c (SMEM scalar id reads
    # stay ahead of the semaphore wait; overlaps DMA with this chunk's VPU).
    @pl.when(c + 1 < nchunk)
    def _():
      issue(c + 1, 1 - slot)
    wait_chunk(slot)

    row0 = pl.multiple_of(c * chunk, chunk)
    soff = pl.multiple_of(slot * chunk, chunk)
    w = wbuf[pl.ds(soff, chunk), :].astype(jnp.float32)          # [chunk, H]

    # Position lookup: one-hot (chunk, MP) @ (MP, H) on the idle MXU from the
    # VMEM-resident table (no HBM traffic, no DMA descriptors).
    pos_ids = pos_ids_ref[pl.ds(row0, chunk), :]                 # [chunk, 1]
    pos_oh = (pos_ids == lax.broadcasted_iota(jnp.int32, (chunk, mp), 1)
              ).astype(jnp.float32)
    x = w + jnp.dot(pos_oh, pos_tab,
                    preferred_element_type=jnp.float32,
                    precision=lax.Precision.HIGHEST)

    # Token-type lookup: tiny table (typically 2 rows) -> pure VPU selects.
    type_ids = type_ids_ref[pl.ds(row0, chunk), :]               # [chunk, 1]
    if tv <= 8:
      for r in range(tv):
        x = x + jnp.where(type_ids == r, 1.0, 0.0) * type_tab[r, :][None, :]
    else:
      type_oh = (type_ids == lax.broadcasted_iota(jnp.int32, (chunk, tv), 1)
                 ).astype(jnp.float32)
      x = x + jnp.dot(type_oh, type_tab,
                      preferred_element_type=jnp.float32,
                      precision=lax.Precision.HIGHEST)

    # Fused LayerNorm in f32 (rsqrt on the EUP slot).
    mean = jnp.mean(x, axis=-1, keepdims=True)
    xc = x - mean
    var = jnp.mean(xc * xc, axis=-1, keepdims=True)
    y = xc * lax.rsqrt(var + eps) * gamma + beta
    out_ref[pl.ds(row0, chunk), :] = y.astype(out_ref.dtype)
    return carry

  lax.fori_loop(0, nchunk, process, 0)
  # TODO(synk): dropout is treated as inference-mode identity; training-mode
  # dropout would use pltpu.prng_seed / pltpu.prng_random_bits on the tile.


def bert_embeddings(input_ids, word_table, pos_table, type_table, gamma, beta,
                    *, token_type_ids=None, position_ids=None,
                    eps=1e-12, token_tile=512, chunk_rows=128):
  """Fused BertEmbeddings forward.

  input_ids:  [B, S] int32
  word_table: [vocab_size, H]              (gathered row-by-row from HBM)
  pos_table:  [max_position_embeddings, H] (VMEM-resident)
  type_table: [type_vocab_size, H]         (VMEM-resident)
  gamma/beta: [H]  LayerNorm weight / bias
  returns:    [B, S, H]
  """
  # TODO(synk): with_naive_feature (ner_emb / ent_emb adds) and the
  # inputs_embeds path are not wired up; they follow the same gather-and-add /
  # resident-table-add patterns as the word / token-type lookups above.
  B, S = input_ids.shape
  _, H = word_table.shape
  MP = pos_table.shape[0]
  TV = type_table.shape[0]

  if position_ids is None:
    position_ids = jnp.broadcast_to(
        jnp.arange(S, dtype=jnp.int32)[None, :], (B, S))
  if token_type_ids is None:
    token_type_ids = jnp.zeros((B, S), dtype=jnp.int32)

  def round_up(x, m):
    return -(-x // m) * m

  N = B * S
  # Sublane granularity of the word/output dtype (8 for f32, 16 for bf16, ...).
  sub = max(8, 32 // word_table.dtype.itemsize)

  # CHUNK: rows per double-buffered word-gather slice (multiple of sub).
  CHUNK = int(min(chunk_rows, token_tile, round_up(N, sub)))
  CHUNK = max(sub, (CHUNK // sub) * sub)

  # Token tile: multiple of CHUNK, capped so the "parallel" grid axis has at
  # least 2 steps whenever there is enough work (keeps both v7x TCs busy).
  TB = int(min(token_tile, round_up(N, CHUNK)))
  TB = max(CHUNK, (TB // CHUNK) * CHUNK)
  if N >= 2 * CHUNK:
    half = round_up(round_up(N, CHUNK) // 2, CHUNK)
    TB = max(CHUNK, min(TB, half))

  G = -(-N // TB)
  Np = G * TB
  pad = Np - N
  assert TB % CHUNK == 0 and Np % TB == 0 and CHUNK % 8 == 0

  def flat_pad(ids):
    f = ids.reshape(-1).astype(jnp.int32)
    if pad:
      f = jnp.concatenate([f, jnp.zeros((pad,), jnp.int32)])
    return f

  word_flat = flat_pad(input_ids)                    # SMEM scalar prefetch
  pos_2d = flat_pad(position_ids).reshape(Np, 1)     # VMEM int block
  type_2d = flat_pad(token_type_ids).reshape(Np, 1)  # VMEM int block

  # Hoist all f32 casts out of the kernel (done once, not per grid step).
  pos_f32 = pos_table.astype(jnp.float32)
  type_f32 = type_table.astype(jnp.float32)
  gamma2d = gamma.astype(jnp.float32).reshape(1, H)
  beta2d = beta.astype(jnp.float32).reshape(1, H)

  out = pl.pallas_call(
      functools.partial(_bert_embeddings_kernel, tb=TB, chunk=CHUNK,
                        eps=float(eps)),
      out_shape=jax.ShapeDtypeStruct((Np, H), word_table.dtype),
      grid_spec=pltpu.PrefetchScalarGridSpec(
          num_scalar_prefetch=1,
          grid=(G,),
          in_specs=[
              pl.BlockSpec(memory_space=pl.ANY),               # word table (HBM)
              pl.BlockSpec((TB, 1), lambda g, *_: (g, 0)),     # position ids
              pl.BlockSpec((TB, 1), lambda g, *_: (g, 0)),     # token-type ids
              pl.BlockSpec((MP, H), lambda g, *_: (0, 0)),     # pos table (resident)
              pl.BlockSpec((TV, H), lambda g, *_: (0, 0)),     # type table (resident)
              pl.BlockSpec((1, H), lambda g, *_: (0, 0)),      # gamma (resident)
              pl.BlockSpec((1, H), lambda g, *_: (0, 0)),      # beta  (resident)
          ],
          out_specs=pl.BlockSpec((TB, H), lambda g, *_: (g, 0)),  # lane-dense
          scratch_shapes=[
              pltpu.VMEM((2 * CHUNK, H), word_table.dtype),    # double-buffered gather
              pltpu.SemaphoreType.DMA((2,)),
          ],
      ),
      compiler_params=pltpu.CompilerParams(
          dimension_semantics=("parallel",)),
  )(word_flat, word_table, pos_2d, type_2d, pos_f32, type_f32,
    gamma2d, beta2d)

  return out[:N].reshape(B, S, H)


if __name__ == "__main__":
  key = jax.random.PRNGKey(0)
  k_ids, k_tt, k_w, k_p, k_t, k_g, k_b = jax.random.split(key, 7)

  batch, seq, hidden = 2, 12, 128
  vocab_size, max_position, type_vocab = 64, 16, 2
  eps = 1e-12

  input_ids = jax.random.randint(k_ids, (batch, seq), 0, vocab_size,
                                 dtype=jnp.int32)
  token_type_ids = jax.random.randint(k_tt, (batch, seq), 0, type_vocab,
                                      dtype=jnp.int32)

  word_table = jax.random.normal(k_w, (vocab_size, hidden), jnp.float32) * 0.02
  pos_table = jax.random.normal(k_p, (max_position, hidden), jnp.float32) * 0.02
  type_table = jax.random.normal(k_t, (type_vocab, hidden), jnp.float32) * 0.02
  gamma = 1.0 + 0.1 * jax.random.normal(k_g, (hidden,), jnp.float32)
  beta = 0.05 * jax.random.normal(k_b, (hidden,), jnp.float32)

  # token_tile=16 / chunk_rows=8 on 24 tokens -> 2 grid steps, 2 chunks per
  # step (double-buffer path) and the padding path all get exercised.
  out = bert_embeddings(input_ids, word_table, pos_table, type_table,
                        gamma, beta, token_type_ids=token_type_ids,
                        eps=eps, token_tile=16, chunk_rows=8)
  out = jax.block_until_ready(out)

  # Pure-JAX reference.
  position_ids = jnp.broadcast_to(
      jnp.arange(seq, dtype=jnp.int32)[None, :], (batch, seq))
  e = (word_table[input_ids] + pos_table[position_ids]
       + type_table[token_type_ids]).astype(jnp.float32)
  mu = e.mean(-1, keepdims=True)
  var = ((e - mu) ** 2).mean(-1, keepdims=True)
  ref = (e - mu) / jnp.sqrt(var + eps) * gamma + beta

  assert out.shape == (batch, seq, hidden)
  err = float(jnp.max(jnp.abs(out - ref)))
  assert jnp.allclose(out, ref, atol=1e-4, rtol=1e-4), err

  print("KERNEL_OK")
</pallas_src>

<mosaic_0001>
module attributes {stable_mosaic.version = 11 : i64} {
  func.func @_bert_embeddings_kernel(%arg0: i32, %arg1: memref<32xi32, #tpu.memory_space<smem>>, %arg2: memref<64x128xf32, #tpu.memory_space<any>>, %arg3: memref<16x1xi32, #tpu.memory_space<vmem>>, %arg4: memref<16x1xi32, #tpu.memory_space<vmem>>, %arg5: memref<16x128xf32, #tpu.memory_space<vmem>>, %arg6: memref<2x128xf32, #tpu.memory_space<vmem>>, %arg7: memref<1x128xf32, #tpu.memory_space<vmem>>, %arg8: memref<1x128xf32, #tpu.memory_space<vmem>>, %arg9: memref<16x128xf32, #tpu.memory_space<vmem>>, %arg10: memref<16x128xf32, #tpu.memory_space<vmem>>, %arg11: memref<2x!tpu.dma_semaphore, #tpu.memory_space<semaphore_mem>>) attributes {dimension_semantics = [#tpu.dimension_semantics<parallel>], iteration_bounds = array<i64: 2>, scalar_prefetch = 1 : i64, scratch_operands = 2 : i64, tpu.core_type = #tpu.core_type<tc>, window_params = [{}, {transform_indices = @transform_1, window_bounds = array<i64: 16, 1>}, {transform_indices = @transform_2, window_bounds = array<i64: 16, 1>}, {pipeline_mode = #tpu.pipeline_mode<synchronous>, transform_indices = @transform_3, window_bounds = array<i64: 16, 128>}, {pipeline_mode = #tpu.pipeline_mode<synchronous>, transform_indices = @transform_4, window_bounds = array<i64: 2, 128>}, {pipeline_mode = #tpu.pipeline_mode<synchronous>, transform_indices = @transform_5, window_bounds = array<i64: 1, 128>}, {pipeline_mode = #tpu.pipeline_mode<synchronous>, transform_indices = @transform_6, window_bounds = array<i64: 1, 128>}, {transform_indices = @transform_7, window_bounds = array<i64: 16, 128>}]} {
    %c16_i32 = arith.constant 16 : i32
    %0 = arith.muli %arg0, %c16_i32 : i32
    %c0_i32 = arith.constant 0 : i32
    %1 = arith.addi %0, %c0_i32 : i32
    %c0_i32_0 = arith.constant 0 : i32
    %c8_i32 = arith.constant 8 : i32
    %2 = arith.muli %c0_i32_0, %c8_i32 : i32
    %c0_i32_1 = arith.constant 0 : i32
    %3 = arith.addi %2, %c0_i32_1 : i32
    %4 = arith.addi %1, %3 : i32
    %5 = arith.index_cast %4 : i32 to index
    %6 = memref.load %arg1[%5] : memref<32xi32, #tpu.memory_space<smem>>
    %c0_i32_2 = arith.constant 0 : i32
    %7 = arith.addi %c0_i32_2, %3 : i32
    %c0_i32_3 = arith.constant 0 : i32
    %c0_i32_4 = arith.constant 0 : i32
    %8 = tpu.memref_slice %arg2[%6, %c0_i32_4] : memref<64x128xf32, #tpu.memory_space<any>> -> memref<1x128xf32, #tpu.memory_space<any>>
    %9 = tpu.memref_squeeze %8 : memref<1x128xf32, #tpu.memory_space<any>> -> memref<128xf32, #tpu.memory_space<any>>
    %c0_i32_5 = arith.constant 0 : i32
    %10 = tpu.memref_slice %arg10[%7, %c0_i32_5] : memref<16x128xf32, #tpu.memory_space<vmem>> -> memref<1x128xf32, #tpu.memory_space<vmem>>
    %11 = tpu.memref_squeeze %10 : memref<1x128xf32, #tpu.memory_space<vmem>> -> memref<128xf32, #tpu.memory_space<vmem>>
    %12 = tpu.memref_slice %arg11[%c0_i32_3] : memref<2x!tpu.dma_semaphore, #tpu.memory_space<semaphore_mem>> -> memref<1x!tpu.dma_semaphore, #tpu.memory_space<semaphore_mem>>
    %13 = tpu.memref_squeeze %12 : memref<1x!tpu.dma_semaphore, #tpu.memory_space<semaphore_mem>> -> memref<!tpu.dma_semaphore, #tpu.memory_space<semaphore_mem>>
    tpu.enqueue_dma source(%9 : memref<128xf32, #tpu.memory_space<any>>) target(%11 : memref<128xf32, #tpu.memory_space<vmem>>) target_semaphore(%13 : memref<!tpu.dma_semaphore, #tpu.memory_space<semaphore_mem>>)
    %c1_i32 = arith.constant 1 : i32
    %14 = arith.addi %2, %c1_i32 : i32
    %15 = arith.addi %1, %14 : i32
    %16 = arith.index_cast %15 : i32 to index
    %17 = memref.load %arg1[%16] : memref<32xi32, #tpu.memory_space<smem>>
    %c0_i32_6 = arith.constant 0 : i32
    %18 = arith.addi %c0_i32_6, %14 : i32
    %c0_i32_7 = arith.constant 0 : i32
    %c0_i32_8 = arith.constant 0 : i32
    %19 = tpu.memref_slice %arg2[%17, %c0_i32_8] : memref<64x128xf32, #tpu.memory_space<any>> -> memref<1x128xf32, #tpu.memory_space<any>>
    %20 = tpu.memref_squeeze %19 : memref<1x128xf32, #tpu.memory_space<any>> -> memref<128xf32, #tpu.memory_space<any>>
    %c0_i32_9 = arith.constant 0 : i32
    %21 = tpu.memref_slice %arg10[%18, %c0_i32_9] : memref<16x128xf32, #tpu.memory_space<vmem>> -> memref<1x128xf32, #tpu.memory_space<vmem>>
    %22 = tpu.memref_squeeze %21 : memref<1x128xf32, #tpu.memory_space<vmem>> -> memref<128xf32, #tpu.memory_space<vmem>>
    %23 = tpu.memref_slice %arg11[%c0_i32_7] : memref<2x!tpu.dma_semaphore, #tpu.memory_space<semaphore_mem>> -> memref<1x!tpu.dma_semaphore, #tpu.memory_space<semaphore_mem>>
    %24 = tpu.memref_squeeze %23 : memref<1x!tpu.dma_semaphore, #tpu.memory_space<semaphore_mem>> -> memref<!tpu.dma_semaphore, #tpu.memory_space<semaphore_mem>>
    tpu.enqueue_dma source(%20 : memref<128xf32, #tpu.memory_space<any>>) target(%22 : memref<128xf32, #tpu.memory_space<vmem>>) target_semaphore(%24 : memref<!tpu.dma_semaphore, #tpu.memory_space<semaphore_mem>>)
    %c2_i32 = arith.constant 2 : i32
    %25 = arith.addi %2, %c2_i32 : i32
    %26 = arith.addi %1, %25 : i32
    %27 = arith.index_cast %26 : i32 to index
    %28 = memref.load %arg1[%27] : memref<32xi32, #tpu.memory_space<smem>>
    %c0_i32_10 = arith.constant 0 : i32
    %29 = arith.addi %c0_i32_10, %25 : i32
    %c0_i32_11 = arith.constant 0 : i32
    %c0_i32_12 = arith.constant 0 : i32
    %30 = tpu.memref_slice %arg2[%28, %c0_i32_12] : memref<64x128xf32, #tpu.memory_space<any>> -> memref<1x128xf32, #tpu.memory_space<any>>
    %31 = tpu.memref_squeeze %30 : memref<1x128xf32, #tpu.memory_space<any>> -> memref<128xf32, #tpu.memory_space<any>>
    %c0_i32_13 = arith.constant 0 : i32
    %32 = tpu.memref_slice %arg10[%29, %c0_i32_13] : memref<16x128xf32, #tpu.memory_space<vmem>> -> memref<1x128xf32, #tpu.memory_space<vmem>>
    %33 = tpu.memref_squeeze %32 : memref<1x128xf32, #tpu.memory_space<vmem>> -> memref<128xf32, #tpu.memory_space<vmem>>
    %34 = tpu.memref_slice %arg11[%c0_i32_11] : memref<2x!tpu.dma_semaphore, #tpu.memory_space<semaphore_mem>> -> memref<1x!tpu.dma_semaphore, #tpu.memory_space<semaphore_mem>>
    %35 = tpu.memref_squeeze %34 : memref<1x!tpu.dma_semaphore, #tpu.memory_space<semaphore_mem>> -> memref<!tpu.dma_semaphore, #tpu.memory_space<semaphore_mem>>
    tpu.enqueue_dma source(%31 : memref<128xf32, #tpu.memory_space<any>>) target(%33 : memref<128xf32, #tpu.memory_space<vmem>>) target_semaphore(%35 : memref<!tpu.dma_semaphore, #tpu.memory_space<semaphore_mem>>)
    %c3_i32 = arith.constant 3 : i32
    %36 = arith.addi %2, %c3_i32 : i32
    %37 = arith.addi %1, %36 : i32
    %38 = arith.index_cast %37 : i32 to index
    %39 = memref.load %arg1[%38] : memref<32xi32, #tpu.memory_space<smem>>
    %c0_i32_14 = arith.constant 0 : i32
    %40 = arith.addi %c0_i32_14, %36 : i32
    %c0_i32_15 = arith.constant 0 : i32
    %c0_i32_16 = arith.constant 0 : i32
    %41 = tpu.memref_slice %arg2[%39, %c0_i32_16] : memref<64x128xf32, #tpu.memory_space<any>> -> memref<1x128xf32, #tpu.memory_space<any>>
    %42 = tpu.memref_squeeze %41 : memref<1x128xf32, #tpu.memory_space<any>> -> memref<128xf32, #tpu.memory_space<any>>
    %c0_i32_17 = arith.constant 0 : i32
    %43 = tpu.memref_slice %arg10[%40, %c0_i32_17] : memref<16x128xf32, #tpu.memory_space<vmem>> -> memref<1x128xf32, #tpu.memory_space<vmem>>
    %44 = tpu.memref_squeeze %43 : memref<1x128xf32, #tpu.memory_space<vmem>> -> memref<128xf32, #tpu.memory_space<vmem>>
    %45 = tpu.memref_slice %arg11[%c0_i32_15] : memref<2x!tpu.dma_semaphore, #tpu.memory_space<semaphore_mem>> -> memref<1x!tpu.dma_semaphore, #tpu.memory_space<semaphore_mem>>
    %46 = tpu.memref_squeeze %45 : memref<1x!tpu.dma_semaphore, #tpu.memory_space<semaphore_mem>> -> memref<!tpu.dma_semaphore, #tpu.memory_space<semaphore_mem>>
    tpu.enqueue_dma source(%42 : memref<128xf32, #tpu.memory_space<any>>) target(%44 : memref<128xf32, #tpu.memory_space<vmem>>) target_semaphore(%46 : memref<!tpu.dma_semaphore, #tpu.memory_space<semaphore_mem>>)
    %c4_i32 = arith.constant 4 : i32
    %47 = arith.addi %2, %c4_i32 : i32
    %48 = arith.addi %1, %47 : i32
    %49 = arith.index_cast %48 : i32 to index
    %50 = memref.load %arg1[%49] : memref<32xi32, #tpu.memory_space<smem>>
    %c0_i32_18 = arith.constant 0 : i32
    %51 = arith.addi %c0_i32_18, %47 : i32
    %c0_i32_19 = arith.constant 0 : i32
    %c0_i32_20 = arith.constant 0 : i32
    %52 = tpu.memref_slice %arg2[%50, %c0_i32_20] : memref<64x128xf32, #tpu.memory_space<any>> -> memref<1x128xf32, #tpu.memory_space<any>>
    %53 = tpu.memref_squeeze %52 : memref<1x128xf32, #tpu.memory_space<any>> -> memref<128xf32, #tpu.memory_space<any>>
    %c0_i32_21 = arith.constant 0 : i32
    %54 = tpu.memref_slice %arg10[%51, %c0_i32_21] : memref<16x128xf32, #tpu.memory_space<vmem>> -> memref<1x128xf32, #tpu.memory_space<vmem>>
    %55 = tpu.memref_squeeze %54 : memref<1x128xf32, #tpu.memory_space<vmem>> -> memref<128xf32, #tpu.memory_space<vmem>>
    %56 = tpu.memref_slice %arg11[%c0_i32_19] : memref<2x!tpu.dma_semaphore, #tpu.memory_space<semaphore_mem>> -> memref<1x!tpu.dma_semaphore, #tpu.memory_space<semaphore_mem>>
    %57 = tpu.memref_squeeze %56 : memref<1x!tpu.dma_semaphore, #tpu.memory_space<semaphore_mem>> -> memref<!tpu.dma_semaphore, #tpu.memory_space<semaphore_mem>>
    tpu.enqueue_dma source(%53 : memref<128xf32, #tpu.memory_space<any>>) target(%55 : memref<128xf32, #tpu.memory_space<vmem>>) target_semaphore(%57 : memref<!tpu.dma_semaphore, #tpu.memory_space<semaphore_mem>>)
    %c5_i32 = arith.constant 5 : i32
    %58 = arith.addi %2, %c5_i32 : i32
    %59 = arith.addi %1, %58 : i32
    %60 = arith.index_cast %59 : i32 to index
    %61 = memref.load %arg1[%60] : memref<32xi32, #tpu.memory_space<smem>>
    %c0_i32_22 = arith.constant 0 : i32
    %62 = arith.addi %c0_i32_22, %58 : i32
    %c0_i32_23 = arith.constant 0 : i32
    %c0_i32_24 = arith.constant 0 : i32
    %63 = tpu.memref_slice %arg2[%61, %c0_i32_24] : memref<64x128xf32, #tpu.memory_space<any>> -> memref<1x128xf32, #tpu.memory_space<any>>
    %64 = tpu.memref_squeeze %63 : memref<1x128xf32, #tpu.memory_space<any>> -> memref<128xf32, #tpu.memory_space<any>>
    %c0_i32_25 = arith.constant 0 : i32
    %65 = tpu.memref_slice %arg10[%62, %c0_i32_25] : memref<16x128xf32, #tpu.memory_space<vmem>> -> memref<1x128xf32, #tpu.memory_space<vmem>>
    %66 = tpu.memref_squeeze %65 : memref<1x128xf32, #tpu.memory_space<vmem>> -> memref<128xf32, #tpu.memory_space<vmem>>
    %67 = tpu.memref_slice %arg11[%c0_i32_23] : memref<2x!tpu.dma_semaphore, #tpu.memory_space<semaphore_mem>> -> memref<1x!tpu.dma_semaphore, #tpu.memory_space<semaphore_mem>>
    %68 = tpu.memref_squeeze %67 : memref<1x!tpu.dma_semaphore, #tpu.memory_space<semaphore_mem>> -> memref<!tpu.dma_semaphore, #tpu.memory_space<semaphore_mem>>
    tpu.enqueue_dma source(%64 : memref<128xf32, #tpu.memory_space<any>>) target(%66 : memref<128xf32, #tpu.memory_space<vmem>>) target_semaphore(%68 : memref<!tpu.dma_semaphore, #tpu.memory_space<semaphore_mem>>)
    %c6_i32 = arith.constant 6 : i32
    %69 = arith.addi %2, %c6_i32 : i32
    %70 = arith.addi %1, %69 : i32
    %71 = arith.index_cast %70 : i32 to index
    %72 = memref.load %arg1[%71] : memref<32xi32, #tpu.memory_space<smem>>
    %c0_i32_26 = arith.constant 0 : i32
    %73 = arith.addi %c0_i32_26, %69 : i32
    %c0_i32_27 = arith.constant 0 : i32
    %c0_i32_28 = arith.constant 0 : i32
    %74 = tpu.memref_slice %arg2[%72, %c0_i32_28] : memref<64x128xf32, #tpu.memory_space<any>> -> memref<1x128xf32, #tpu.memory_space<any>>
    %75 = tpu.memref_squeeze %74 : memref<1x128xf32, #tpu.memory_space<any>> -> memref<128xf32, #tpu.memory_space<any>>
    %c0_i32_29 = arith.constant 0 : i32
    %76 = tpu.memref_slice %arg10[%73, %c0_i32_29] : memref<16x128xf32, #tpu.memory_space<vmem>> -> memref<1x128xf32, #tpu.memory_space<vmem>>
    %77 = tpu.memref_squeeze %76 : memref<1x128xf32, #tpu.memory_space<vmem>> -> memref<128xf32, #tpu.memory_space<vmem>>
    %78 = tpu.memref_slice %arg11[%c0_i32_27] : memref<2x!tpu.dma_semaphore, #tpu.memory_space<semaphore_mem>> -> memref<1x!tpu.dma_semaphore, #tpu.memory_space<semaphore_mem>>
    %79 = tpu.memref_squeeze %78 : memref<1x!tpu.dma_semaphore, #tpu.memory_space<semaphore_mem>> -> memref<!tpu.dma_semaphore, #tpu.memory_space<semaphore_mem>>
    tpu.enqueue_dma source(%75 : memref<128xf32, #tpu.memory_space<any>>) target(%77 : memref<128xf32, #tpu.memory_space<vmem>>) target_semaphore(%79 : memref<!tpu.dma_semaphore, #tpu.memory_space<semaphore_mem>>)
    %c7_i32 = arith.constant 7 : i32
    %80 = arith.addi %2, %c7_i32 : i32
    %81 = arith.addi %1, %80 : i32
    %82 = arith.index_cast %81 : i32 to index
    %83 = memref.load %arg1[%82] : memref<32xi32, #tpu.memory_space<smem>>
    %c0_i32_30 = arith.constant 0 : i32
    %84 = arith.addi %c0_i32_30, %80 : i32
    %c0_i32_31 = arith.constant 0 : i32
    %c0_i32_32 = arith.constant 0 : i32
    %85 = tpu.memref_slice %arg2[%83, %c0_i32_32] : memref<64x128xf32, #tpu.memory_space<any>> -> memref<1x128xf32, #tpu.memory_space<any>>
    %86 = tpu.memref_squeeze %85 : memref<1x128xf32, #tpu.memory_space<any>> -> memref<128xf32, #tpu.memory_space<any>>
    %c0_i32_33 = arith.constant 0 : i32
    %87 = tpu.memref_slice %arg10[%84, %c0_i32_33] : memref<16x128xf32, #tpu.memory_space<vmem>> -> memref<1x128xf32, #tpu.memory_space<vmem>>
    %88 = tpu.memref_squeeze %87 : memref<1x128xf32, #tpu.memory_space<vmem>> -> memref<128xf32, #tpu.memory_space<vmem>>
    %89 = tpu.memref_slice %arg11[%c0_i32_31] : memref<2x!tpu.dma_semaphore, #tpu.memory_space<semaphore_mem>> -> memref<1x!tpu.dma_semaphore, #tpu.memory_space<semaphore_mem>>
    %90 = tpu.memref_squeeze %89 : memref<1x!tpu.dma_semaphore, #tpu.memory_space<semaphore_mem>> -> memref<!tpu.dma_semaphore, #tpu.memory_space<semaphore_mem>>
    tpu.enqueue_dma source(%86 : memref<128xf32, #tpu.memory_space<any>>) target(%88 : memref<128xf32, #tpu.memory_space<vmem>>) target_semaphore(%90 : memref<!tpu.dma_semaphore, #tpu.memory_space<semaphore_mem>>)
    %c1_i32_34 = arith.constant 1 : i32
    %c0 = arith.constant 0 : index
    %c0_35 = arith.constant 0 : index
    %91 = vector.load %arg7[%c0, %c0_35] : memref<1x128xf32, #tpu.memory_space<vmem>>, vector<1x128xf32>
    %c0_36 = arith.constant 0 : index
    %c0_37 = arith.constant 0 : index
    %92 = vector.load %arg8[%c0_36, %c0_37] : memref<1x128xf32, #tpu.memory_space<vmem>>, vector<1x128xf32>
    %c0_38 = arith.constant 0 : index
    %c0_39 = arith.constant 0 : index
    %93 = vector.load %arg5[%c0_38, %c0_39] : memref<16x128xf32, #tpu.memory_space<vmem>>, vector<16x128xf32>
    %c0_40 = arith.constant 0 : index
    %c0_41 = arith.constant 0 : index
    %94 = vector.load %arg6[%c0_40, %c0_41] : memref<2x128xf32, #tpu.memory_space<vmem>>, vector<2x128xf32>
    %c0_i32_42 = arith.constant 0 : i32
    %c2_i32_43 = arith.constant 2 : i32
    %95 = arith.addi %c0_i32_42, %c2_i32_43 : i32
    %c1_i32_44 = arith.constant 1 : i32
    scf.for %arg12 = %c0_i32_42 to %95 step %c1_i32_44  : i32 {
      %c2_i32_46 = arith.constant 2 : i32
      %c0_i32_47 = arith.constant 0 : i32
      %96 = arith.cmpi eq, %c2_i32_46, %c0_i32_47 : i32
      %c1_i32_48 = arith.constant 1 : i32
      %97 = arith.select %96, %c1_i32_48, %c2_i32_46 : i32
      %98 = arith.remsi %arg12, %97 : i32
      %c0_i32_49 = arith.constant 0 : i32
      %99 = arith.cmpi ne, %98, %c0_i32_49 : i32
      %c0_i32_50 = arith.constant 0 : i32
      %100 = arith.cmpi slt, %98, %c0_i32_50 : i32
      %c0_i32_51 = arith.constant 0 : i32
      %101 = arith.cmpi slt, %97, %c0_i32_51 : i32
      %102 = arith.xori %100, %101 : i1
      %103 = arith.andi %102, %99 : i1
      %104 = arith.addi %98, %97 : i32
      %105 = arith.select %103, %104, %98 : i32
      %c1_i32_52 = arith.constant 1 : i32
      %106 = arith.addi %arg12, %c1_i32_52 : i32
      %c2_i32_53 = arith.constant 2 : i32
      %107 = arith.cmpi slt, %106, %c2_i32_53 : i32
      %108 = arith.extui %107 : i1 to i32
      %c0_i32_54 = arith.constant 0 : i32
      %109 = arith.cmpi ne, %108, %c0_i32_54 : i32
      scf.if %109 {
        %c1_i32_105 = arith.constant 1 : i32
        %221 = arith.addi %arg12, %c1_i32_105 : i32
        %c1_i32_106 = arith.constant 1 : i32
        %222 = arith.subi %c1_i32_106, %105 : i32
        %c8_i32_107 = arith.constant 8 : i32
        %223 = arith.muli %221, %c8_i32_107 : i32
        %224 = arith.addi %0, %223 : i32
        %c8_i32_108 = arith.constant 8 : i32
        %225 = arith.muli %222, %c8_i32_108 : i32
        %c0_i32_109 = arith.constant 0 : i32
        %c8_i32_110 = arith.constant 8 : i32
        %226 = arith.muli %c0_i32_109, %c8_i32_110 : i32
        %c0_i32_111 = arith.constant 0 : i32
        %227 = arith.addi %226, %c0_i32_111 : i32
        %228 = arith.addi %224, %227 : i32
        %229 = arith.index_cast %228 : i32 to index
        %230 = memref.load %arg1[%229] : memref<32xi32, #tpu.memory_space<smem>>
        %231 = arith.addi %225, %227 : i32
        %c0_i32_112 = arith.constant 0 : i32
        %232 = tpu.memref_slice %arg2[%230, %c0_i32_112] : memref<64x128xf32, #tpu.memory_space<any>> -> memref<1x128xf32, #tpu.memory_space<any>>
        %233 = tpu.memref_squeeze %232 : memref<1x128xf32, #tpu.memory_space<any>> -> memref<128xf32, #tpu.memory_space<any>>
        %c0_i32_113 = arith.constant 0 : i32
        %234 = tpu.memref_slice %arg10[%231, %c0_i32_113] : memref<16x128xf32, #tpu.memory_space<vmem>> -> memref<1x128xf32, #tpu.memory_space<vmem>>
        %235 = tpu.memref_squeeze %234 : memref<1x128xf32, #tpu.memory_space<vmem>> -> memref<128xf32, #tpu.memory_space<vmem>>
        %236 = tpu.memref_slice %arg11[%222] : memref<2x!tpu.dma_semaphore, #tpu.memory_space<semaphore_mem>> -> memref<1x!tpu.dma_semaphore, #tpu.memory_space<semaphore_mem>>
        %237 = tpu.memref_squeeze %236 : memref<1x!tpu.dma_semaphore, #tpu.memory_space<semaphore_mem>> -> memref<!tpu.dma_semaphore, #tpu.memory_space<semaphore_mem>>
        tpu.enqueue_dma source(%233 : memref<128xf32, #tpu.memory_space<any>>) target(%235 : memref<128xf32, #tpu.memory_space<vmem>>) target_semaphore(%237 : memref<!tpu.dma_semaphore, #tpu.memory_space<semaphore_mem>>)
        %c1_i32_114 = arith.constant 1 : i32
        %238 = arith.addi %226, %c1_i32_114 : i32
        %239 = arith.addi %224, %238 : i32
        %240 = arith.index_cast %239 : i32 to index
        %241 = memref.load %arg1[%240] : memref<32xi32, #tpu.memory_space<smem>>
        %242 = arith.addi %225, %238 : i32
        %c0_i32_115 = arith.constant 0 : i32
        %243 = tpu.memref_slice %arg2[%241, %c0_i32_115] : memref<64x128xf32, #tpu.memory_space<any>> -> memref<1x128xf32, #tpu.memory_space<any>>
        %244 = tpu.memref_squeeze %243 : memref<1x128xf32, #tpu.memory_space<any>> -> memref<128xf32, #tpu.memory_space<any>>
        %c0_i32_116 = arith.constant 0 : i32
        %245 = tpu.memref_slice %arg10[%242, %c0_i32_116] : memref<16x128xf32, #tpu.memory_space<vmem>> -> memref<1x128xf32, #tpu.memory_space<vmem>>
        %246 = tpu.memref_squeeze %245 : memref<1x128xf32, #tpu.memory_space<vmem>> -> memref<128xf32, #tpu.memory_space<vmem>>
        %247 = tpu.memref_slice %arg11[%222] : memref<2x!tpu.dma_semaphore, #tpu.memory_space<semaphore_mem>> -> memref<1x!tpu.dma_semaphore, #tpu.memory_space<semaphore_mem>>
        %248 = tpu.memref_squeeze %247 : memref<1x!tpu.dma_semaphore, #tpu.memory_space<semaphore_mem>> -> memref<!tpu.dma_semaphore, #tpu.memory_space<semaphore_mem>>
        tpu.enqueue_dma source(%244 : memref<128xf32, #tpu.memory_space<any>>) target(%246 : memref<128xf32, #tpu.memory_space<vmem>>) target_semaphore(%248 : memref<!tpu.dma_semaphore, #tpu.memory_space<semaphore_mem>>)
        %c2_i32_117 = arith.constant 2 : i32
        %249 = arith.addi %226, %c2_i32_117 : i32
        %250 = arith.addi %224, %249 : i32
        %251 = arith.index_cast %250 : i32 to index
        %252 = memref.load %arg1[%251] : memref<32xi32, #tpu.memory_space<smem>>
        %253 = arith.addi %225, %249 : i32
        %c0_i32_118 = arith.constant 0 : i32
        %254 = tpu.memref_slice %arg2[%252, %c0_i32_118] : memref<64x128xf32, #tpu.memory_space<any>> -> memref<1x128xf32, #tpu.memory_space<any>>
        %255 = tpu.memref_squeeze %254 : memref<1x128xf32, #tpu.memory_space<any>> -> memref<128xf32, #tpu.memory_space<any>>
        %c0_i32_119 = arith.constant 0 : i32
        %256 = tpu.memref_slice %arg10[%253, %c0_i32_119] : memref<16x128xf32, #tpu.memory_space<vmem>> -> memref<1x128xf32, #tpu.memory_space<vmem>>
        %257 = tpu.memref_squeeze %256 : memref<1x128xf32, #tpu.memory_space<vmem>> -> memref<128xf32, #tpu.memory_space<vmem>>
        %258 = tpu.memref_slice %arg11[%222] : memref<2x!tpu.dma_semaphore, #tpu.memory_space<semaphore_mem>> -> memref<1x!tpu.dma_semaphore, #tpu.memory_space<semaphore_mem>>
        %259 = tpu.memref_squeeze %258 : memref<1x!tpu.dma_semaphore, #tpu.memory_space<semaphore_mem>> -> memref<!tpu.dma_semaphore, #tpu.memory_space<semaphore_mem>>
        tpu.enqueue_dma source(%255 : memref<128xf32, #tpu.memory_space<any>>) target(%257 : memref<128xf32, #tpu.memory_space<vmem>>) target_semaphore(%259 : memref<!tpu.dma_semaphore, #tpu.memory_space<semaphore_mem>>)
        %c3_i32_120 = arith.constant 3 : i32
        %260 = arith.addi %226, %c3_i32_120 : i32
        %261 = arith.addi %224, %260 : i32
        %262 = arith.index_cast %261 : i32 to index
        %263 = memref.load %arg1[%262] : memref<32xi32, #tpu.memory_space<smem>>
        %264 = arith.addi %225, %260 : i32
        %c0_i32_121 = arith.constant 0 : i32
        %265 = tpu.memref_slice %arg2[%263, %c0_i32_121] : memref<64x128xf32, #tpu.memory_space<any>> -> memref<1x128xf32, #tpu.memory_space<any>>
        %266 = tpu.memref_squeeze %265 : memref<1x128xf32, #tpu.memory_space<any>> -> memref<128xf32, #tpu.memory_space<any>>
        %c0_i32_122 = arith.constant 0 : i32
        %267 = tpu.memref_slice %arg10[%264, %c0_i32_122] : memref<16x128xf32, #tpu.memory_space<vmem>> -> memref<1x128xf32, #tpu.memory_space<vmem>>
        %268 = tpu.memref_squeeze %267 : memref<1x128xf32, #tpu.memory_space<vmem>> -> memref<128xf32, #tpu.memory_space<vmem>>
        %269 = tpu.memref_slice %arg11[%222] : memref<2x!tpu.dma_semaphore, #tpu.memory_space<semaphore_mem>> -> memref<1x!tpu.dma_semaphore, #tpu.memory_space<semaphore_mem>>
        %270 = tpu.memref_squeeze %269 : memref<1x!tpu.dma_semaphore, #tpu.memory_space<semaphore_mem>> -> memref<!tpu.dma_semaphore, #tpu.memory_space<semaphore_mem>>
        tpu.enqueue_dma source(%266 : memref<128xf32, #tpu.memory_space<any>>) target(%268 : memref<128xf32, #tpu.memory_space<vmem>>) target_semaphore(%270 : memref<!tpu.dma_semaphore, #tpu.memory_space<semaphore_mem>>)
        %c4_i32_123 = arith.constant 4 : i32
        %271 = arith.addi %226, %c4_i32_123 : i32
        %272 = arith.addi %224, %271 : i32
        %273 = arith.index_cast %272 : i32 to index
        %274 = memref.load %arg1[%273] : memref<32xi32, #tpu.memory_space<smem>>
        %275 = arith.addi %225, %271 : i32
        %c0_i32_124 = arith.constant 0 : i32
        %276 = tpu.memref_slice %arg2[%274, %c0_i32_124] : memref<64x128xf32, #tpu.memory_space<any>> -> memref<1x128xf32, #tpu.memory_space<any>>
        %277 = tpu.memref_squeeze %276 : memref<1x128xf32, #tpu.memory_space<any>> -> memref<128xf32, #tpu.memory_space<any>>
        %c0_i32_125 = arith.constant 0 : i32
        %278 = tpu.memref_slice %arg10[%275, %c0_i32_125] : memref<16x128xf32, #tpu.memory_space<vmem>> -> memref<1x128xf32, #tpu.memory_space<vmem>>
        %279 = tpu.memref_squeeze %278 : memref<1x128xf32, #tpu.memory_space<vmem>> -> memref<128xf32, #tpu.memory_space<vmem>>
        %280 = tpu.memref_slice %arg11[%222] : memref<2x!tpu.dma_semaphore, #tpu.memory_space<semaphore_mem>> -> memref<1x!tpu.dma_semaphore, #tpu.memory_space<semaphore_mem>>
        %281 = tpu.memref_squeeze %280 : memref<1x!tpu.dma_semaphore, #tpu.memory_space<semaphore_mem>> -> memref<!tpu.dma_semaphore, #tpu.memory_space<semaphore_mem>>
        tpu.enqueue_dma source(%277 : memref<128xf32, #tpu.memory_space<any>>) target(%279 : memref<128xf32, #tpu.memory_space<vmem>>) target_semaphore(%281 : memref<!tpu.dma_semaphore, #tpu.memory_space<semaphore_mem>>)
        %c5_i32_126 = arith.constant 5 : i32
        %282 = arith.addi %226, %c5_i32_126 : i32
        %283 = arith.addi %224, %282 : i32
        %284 = arith.index_cast %283 : i32 to index
        %285 = memref.load %arg1[%284] : memref<32xi32, #tpu.memory_space<smem>>
        %286 = arith.addi %225, %282 : i32
        %c0_i32_127 = arith.constant 0 : i32
        %287 = tpu.memref_slice %arg2[%285, %c0_i32_127] : memref<64x128xf32, #tpu.memory_space<any>> -> memref<1x128xf32, #tpu.memory_space<any>>
        %288 = tpu.memref_squeeze %287 : memref<1x128xf32, #tpu.memory_space<any>> -> memref<128xf32, #tpu.memory_space<any>>
        %c0_i32_128 = arith.constant 0 : i32
        %289 = tpu.memref_slice %arg10[%286, %c0_i32_128] : memref<16x128xf32, #tpu.memory_space<vmem>> -> memref<1x128xf32, #tpu.memory_space<vmem>>
        %290 = tpu.memref_squeeze %289 : memref<1x128xf32, #tpu.memory_space<vmem>> -> memref<128xf32, #tpu.memory_space<vmem>>
        %291 = tpu.memref_slice %arg11[%222] : memref<2x!tpu.dma_semaphore, #tpu.memory_space<semaphore_mem>> -> memref<1x!tpu.dma_semaphore, #tpu.memory_space<semaphore_mem>>
        %292 = tpu.memref_squeeze %291 : memref<1x!tpu.dma_semaphore, #tpu.memory_space<semaphore_mem>> -> memref<!tpu.dma_semaphore, #tpu.memory_space<semaphore_mem>>
        tpu.enqueue_dma source(%288 : memref<128xf32, #tpu.memory_space<any>>) target(%290 : memref<128xf32, #tpu.memory_space<vmem>>) target_semaphore(%292 : memref<!tpu.dma_semaphore, #tpu.memory_space<semaphore_mem>>)
        %c6_i32_129 = arith.constant 6 : i32
        %293 = arith.addi %226, %c6_i32_129 : i32
        %294 = arith.addi %224, %293 : i32
        %295 = arith.index_cast %294 : i32 to index
        %296 = memref.load %arg1[%295] : memref<32xi32, #tpu.memory_space<smem>>
        %297 = arith.addi %225, %293 : i32
        %c0_i32_130 = arith.constant 0 : i32
        %298 = tpu.memref_slice %arg2[%296, %c0_i32_130] : memref<64x128xf32, #tpu.memory_space<any>> -> memref<1x128xf32, #tpu.memory_space<any>>
        %299 = tpu.memref_squeeze %298 : memref<1x128xf32, #tpu.memory_space<any>> -> memref<128xf32, #tpu.memory_space<any>>
        %c0_i32_131 = arith.constant 0 : i32
        %300 = tpu.memref_slice %arg10[%297, %c0_i32_131] : memref<16x128xf32, #tpu.memory_space<vmem>> -> memref<1x128xf32, #tpu.memory_space<vmem>>
        %301 = tpu.memref_squeeze %300 : memref<1x128xf32, #tpu.memory_space<vmem>> -> memref<128xf32, #tpu.memory_space<vmem>>
        %302 = tpu.memref_slice %arg11[%222] : memref<2x!tpu.dma_semaphore, #tpu.memory_space<semaphore_mem>> -> memref<1x!tpu.dma_semaphore, #tpu.memory_space<semaphore_mem>>
        %303 = tpu.memref_squeeze %302 : memref<1x!tpu.dma_semaphore, #tpu.memory_space<semaphore_mem>> -> memref<!tpu.dma_semaphore, #tpu.memory_space<semaphore_mem>>
        tpu.enqueue_dma source(%299 : memref<128xf32, #tpu.memory_space<any>>) target(%301 : memref<128xf32, #tpu.memory_space<vmem>>) target_semaphore(%303 : memref<!tpu.dma_semaphore, #tpu.memory_space<semaphore_mem>>)
        %c7_i32_132 = arith.constant 7 : i32
        %304 = arith.addi %226, %c7_i32_132 : i32
        %305 = arith.addi %224, %304 : i32
        %306 = arith.index_cast %305 : i32 to index
        %307 = memref.load %arg1[%306] : memref<32xi32, #tpu.memory_space<smem>>
        %308 = arith.addi %225, %304 : i32
        %c0_i32_133 = arith.constant 0 : i32
        %309 = tpu.memref_slice %arg2[%307, %c0_i32_133] : memref<64x128xf32, #tpu.memory_space<any>> -> memref<1x128xf32, #tpu.memory_space<any>>
        %310 = tpu.memref_squeeze %309 : memref<1x128xf32, #tpu.memory_space<any>> -> memref<128xf32, #tpu.memory_space<any>>
        %c0_i32_134 = arith.constant 0 : i32
        %311 = tpu.memref_slice %arg10[%308, %c0_i32_134] : memref<16x128xf32, #tpu.memory_space<vmem>> -> memref<1x128xf32, #tpu.memory_space<vmem>>
        %312 = tpu.memref_squeeze %311 : memref<1x128xf32, #tpu.memory_space<vmem>> -> memref<128xf32, #tpu.memory_space<vmem>>
        %313 = tpu.memref_slice %arg11[%222] : memref<2x!tpu.dma_semaphore, #tpu.memory_space<semaphore_mem>> -> memref<1x!tpu.dma_semaphore, #tpu.memory_space<semaphore_mem>>
        %314 = tpu.memref_squeeze %313 : memref<1x!tpu.dma_semaphore, #tpu.memory_space<semaphore_mem>> -> memref<!tpu.dma_semaphore, #tpu.memory_space<semaphore_mem>>
        tpu.enqueue_dma source(%310 : memref<128xf32, #tpu.memory_space<any>>) target(%312 : memref<128xf32, #tpu.memory_space<vmem>>) target_semaphore(%314 : memref<!tpu.dma_semaphore, #tpu.memory_space<semaphore_mem>>)
        %c1_i32_135 = arith.constant 1 : i32
      } else {
      }
      %c0_i32_55 = arith.constant 0 : i32
      %c0_i32_56 = arith.constant 0 : i32
      %c0_i32_57 = arith.constant 0 : i32
      %c0_i32_58 = arith.constant 0 : i32
      %110 = tpu.memref_slice %arg2[%c0_i32_56, %c0_i32_58] : memref<64x128xf32, #tpu.memory_space<any>> -> memref<1x128xf32, #tpu.memory_space<any>>
      %111 = tpu.memref_squeeze %110 : memref<1x128xf32, #tpu.memory_space<any>> -> memref<128xf32, #tpu.memory_space<any>>
      %c0_i32_59 = arith.constant 0 : i32
      %112 = tpu.memref_slice %arg10[%c0_i32_57, %c0_i32_59] : memref<16x128xf32, #tpu.memory_space<vmem>> -> memref<1x128xf32, #tpu.memory_space<vmem>>
      %113 = tpu.memref_squeeze %112 : memref<1x128xf32, #tpu.memory_space<vmem>> -> memref<128xf32, #tpu.memory_space<vmem>>
      %114 = tpu.memref_slice %arg11[%105] : memref<2x!tpu.dma_semaphore, #tpu.memory_space<semaphore_mem>> -> memref<1x!tpu.dma_semaphore, #tpu.memory_space<semaphore_mem>>
      %115 = tpu.memref_squeeze %114 : memref<1x!tpu.dma_semaphore, #tpu.memory_space<semaphore_mem>> -> memref<!tpu.dma_semaphore, #tpu.memory_space<semaphore_mem>>
      tpu.wait_dma2 semaphore(%115 : memref<!tpu.dma_semaphore, #tpu.memory_space<semaphore_mem>>) src(%111 : memref<128xf32, #tpu.memory_space<any>>) dst(%113 : memref<128xf32, #tpu.memory_space<vmem>>)
      %c0_i32_60 = arith.constant 0 : i32
      %c0_i32_61 = arith.constant 0 : i32
      %c0_i32_62 = arith.constant 0 : i32
      %116 = tpu.memref_slice %arg2[%c0_i32_60, %c0_i32_62] : memref<64x128xf32, #tpu.memory_space<any>> -> memref<1x128xf32, #tpu.memory_space<any>>
      %117 = tpu.memref_squeeze %116 : memref<1x128xf32, #tpu.memory_space<any>> -> memref<128xf32, #tpu.memory_space<any>>
      %c0_i32_63 = arith.constant 0 : i32
      %118 = tpu.memref_slice %arg10[%c0_i32_61, %c0_i32_63] : memref<16x128xf32, #tpu.memory_space<vmem>> -> memref<1x128xf32, #tpu.memory_space<vmem>>
      %119 = tpu.memref_squeeze %118 : memref<1x128xf32, #tpu.memory_space<vmem>> -> memref<128xf32, #tpu.memory_space<vmem>>
      %120 = tpu.memref_slice %arg11[%105] : memref<2x!tpu.dma_semaphore, #tpu.memory_space<semaphore_mem>> -> memref<1x!tpu.dma_semaphore, #tpu.memory_space<semaphore_mem>>
      %121 = tpu.memref_squeeze %120 : memref<1x!tpu.dma_semaphore, #tpu.memory_space<semaphore_mem>> -> memref<!tpu.dma_semaphore, #tpu.memory_space<semaphore_mem>>
      tpu.wait_dma2 semaphore(%121 : memref<!tpu.dma_semaphore, #tpu.memory_space<semaphore_mem>>) src(%117 : memref<128xf32, #tpu.memory_space<any>>) dst(%119 : memref<128xf32, #tpu.memory_space<vmem>>)
      %c0_i32_64 = arith.constant 0 : i32
      %c0_i32_65 = arith.constant 0 : i32
      %c0_i32_66 = arith.constant 0 : i32
      %122 = tpu.memref_slice %arg2[%c0_i32_64, %c0_i32_66] : memref<64x128xf32, #tpu.memory_space<any>> -> memref<1x128xf32, #tpu.memory_space<any>>
      %123 = tpu.memref_squeeze %122 : memref<1x128xf32, #tpu.memory_space<any>> -> memref<128xf32, #tpu.memory_space<any>>
      %c0_i32_67 = arith.constant 0 : i32
      %124 = tpu.memref_slice %arg10[%c0_i32_65, %c0_i32_67] : memref<16x128xf32, #tpu.memory_space<vmem>> -> memref<1x128xf32, #tpu.memory_space<vmem>>
      %125 = tpu.memref_squeeze %124 : memref<1x128xf32, #tpu.memory_space<vmem>> -> memref<128xf32, #tpu.memory_space<vmem>>
      %126 = tpu.memref_slice %arg11[%105] : memref<2x!tpu.dma_semaphore, #tpu.memory_space<semaphore_mem>> -> memref<1x!tpu.dma_semaphore, #tpu.memory_space<semaphore_mem>>
      %127 = tpu.memref_squeeze %126 : memref<1x!tpu.dma_semaphore, #tpu.memory_space<semaphore_mem>> -> memref<!tpu.dma_semaphore, #tpu.memory_space<semaphore_mem>>
      tpu.wait_dma2 semaphore(%127 : memref<!tpu.dma_semaphore, #tpu.memory_space<semaphore_mem>>) src(%123 : memref<128xf32, #tpu.memory_space<any>>) dst(%125 : memref<128xf32, #tpu.memory_space<vmem>>)
      %c0_i32_68 = arith.constant 0 : i32
      %c0_i32_69 = arith.constant 0 : i32
      %c0_i32_70 = arith.constant 0 : i32
      %128 = tpu.memref_slice %arg2[%c0_i32_68, %c0_i32_70] : memref<64x128xf32, #tpu.memory_space<any>> -> memref<1x128xf32, #tpu.memory_space<any>>
      %129 = tpu.memref_squeeze %128 : memref<1x128xf32, #tpu.memory_space<any>> -> memref<128xf32, #tpu.memory_space<any>>
      %c0_i32_71 = arith.constant 0 : i32
      %130 = tpu.memref_slice %arg10[%c0_i32_69, %c0_i32_71] : memref<16x128xf32, #tpu.memory_space<vmem>> -> memref<1x128xf32, #tpu.memory_space<vmem>>
      %131 = tpu.memref_squeeze %130 : memref<1x128xf32, #tpu.memory_space<vmem>> -> memref<128xf32, #tpu.memory_space<vmem>>
      %132 = tpu.memref_slice %arg11[%105] : memref<2x!tpu.dma_semaphore, #tpu.memory_space<semaphore_mem>> -> memref<1x!tpu.dma_semaphore, #tpu.memory_space<semaphore_mem>>
      %133 = tpu.memref_squeeze %132 : memref<1x!tpu.dma_semaphore, #tpu.memory_space<semaphore_mem>> -> memref<!tpu.dma_semaphore, #tpu.memory_space<semaphore_mem>>
      tpu.wait_dma2 semaphore(%133 : memref<!tpu.dma_semaphore, #tpu.memory_space<semaphore_mem>>) src(%129 : memref<128xf32, #tpu.memory_space<any>>) dst(%131 : memref<128xf32, #tpu.memory_space<vmem>>)
      %c0_i32_72 = arith.constant 0 : i32
      %c0_i32_73 = arith.constant 0 : i32
      %c0_i32_74 = arith.constant 0 : i32
      %134 = tpu.memref_slice %arg2[%c0_i32_72, %c0_i32_74] : memref<64x128xf32, #tpu.memory_space<any>> -> memref<1x128xf32, #tpu.memory_space<any>>
      %135 = tpu.memref_squeeze %134 : memref<1x128xf32, #tpu.memory_space<any>> -> memref<128xf32, #tpu.memory_space<any>>
      %c0_i32_75 = arith.constant 0 : i32
      %136 = tpu.memref_slice %arg10[%c0_i32_73, %c0_i32_75] : memref<16x128xf32, #tpu.memory_space<vmem>> -> memref<1x128xf32, #tpu.memory_space<vmem>>
      %137 = tpu.memref_squeeze %136 : memref<1x128xf32, #tpu.memory_space<vmem>> -> memref<128xf32, #tpu.memory_space<vmem>>
      %138 = tpu.memref_slice %arg11[%105] : memref<2x!tpu.dma_semaphore, #tpu.memory_space<semaphore_mem>> -> memref<1x!tpu.dma_semaphore, #tpu.memory_space<semaphore_mem>>
      %139 = tpu.memref_squeeze %138 : memref<1x!tpu.dma_semaphore, #tpu.memory_space<semaphore_mem>> -> memref<!tpu.dma_semaphore, #tpu.memory_space<semaphore_mem>>
      tpu.wait_dma2 semaphore(%139 : memref<!tpu.dma_semaphore, #tpu.memory_space<semaphore_mem>>) src(%135 : memref<128xf32, #tpu.memory_space<any>>) dst(%137 : memref<128xf32, #tpu.memory_space<vmem>>)
      %c0_i32_76 = arith.constant 0 : i32
      %c0_i32_77 = arith.constant 0 : i32
      %c0_i32_78 = arith.constant 0 : i32
      %140 = tpu.memref_slice %arg2[%c0_i32_76, %c0_i32_78] : memref<64x128xf32, #tpu.memory_space<any>> -> memref<1x128xf32, #tpu.memory_space<any>>
      %141 = tpu.memref_squeeze %140 : memref<1x128xf32, #tpu.memory_space<any>> -> memref<128xf32, #tpu.memory_space<any>>
      %c0_i32_79 = arith.constant 0 : i32
      %142 = tpu.memref_slice %arg10[%c0_i32_77, %c0_i32_79] : memref<16x128xf32, #tpu.memory_space<vmem>> -> memref<1x128xf32, #tpu.memory_space<vmem>>
      %143 = tpu.memref_squeeze %142 : memref<1x128xf32, #tpu.memory_space<vmem>> -> memref<128xf32, #tpu.memory_space<vmem>>
      %144 = tpu.memref_slice %arg11[%105] : memref<2x!tpu.dma_semaphore, #tpu.memory_space<semaphore_mem>> -> memref<1x!tpu.dma_semaphore, #tpu.memory_space<semaphore_mem>>
      %145 = tpu.memref_squeeze %144 : memref<1x!tpu.dma_semaphore, #tpu.memory_space<semaphore_mem>> -> memref<!tpu.dma_semaphore, #tpu.memory_space<semaphore_mem>>
      tpu.wait_dma2 semaphore(%145 : memref<!tpu.dma_semaphore, #tpu.memory_space<semaphore_mem>>) src(%141 : memref<128xf32, #tpu.memory_space<any>>) dst(%143 : memref<128xf32, #tpu.memory_space<vmem>>)
      %c0_i32_80 = arith.constant 0 : i32
      %c0_i32_81 = arith.constant 0 : i32
      %c0_i32_82 = arith.constant 0 : i32
      %146 = tpu.memref_slice %arg2[%c0_i32_80, %c0_i32_82] : memref<64x128xf32, #tpu.memory_space<any>> -> memref<1x128xf32, #tpu.memory_space<any>>
      %147 = tpu.memref_squeeze %146 : memref<1x128xf32, #tpu.memory_space<any>> -> memref<128xf32, #tpu.memory_space<any>>
      %c0_i32_83 = arith.constant 0 : i32
      %148 = tpu.memref_slice %arg10[%c0_i32_81, %c0_i32_83] : memref<16x128xf32, #tpu.memory_space<vmem>> -> memref<1x128xf32, #tpu.memory_space<vmem>>
      %149 = tpu.memref_squeeze %148 : memref<1x128xf32, #tpu.memory_space<vmem>> -> memref<128xf32, #tpu.memory_space<vmem>>
      %150 = tpu.memref_slice %arg11[%105] : memref<2x!tpu.dma_semaphore, #tpu.memory_space<semaphore_mem>> -> memref<1x!tpu.dma_semaphore, #tpu.memory_space<semaphore_mem>>
      %151 = tpu.memref_squeeze %150 : memref<1x!tpu.dma_semaphore, #tpu.memory_space<semaphore_mem>> -> memref<!tpu.dma_semaphore, #tpu.memory_space<semaphore_mem>>
      tpu.wait_dma2 semaphore(%151 : memref<!tpu.dma_semaphore, #tpu.memory_space<semaphore_mem>>) src(%147 : memref<128xf32, #tpu.memory_space<any>>) dst(%149 : memref<128xf32, #tpu.memory_space<vmem>>)
      %c0_i32_84 = arith.constant 0 : i32
      %c0_i32_85 = arith.constant 0 : i32
      %c0_i32_86 = arith.constant 0 : i32
      %152 = tpu.memref_slice %arg2[%c0_i32_84, %c0_i32_86] : memref<64x128xf32, #tpu.memory_space<any>> -> memref<1x128xf32, #tpu.memory_space<any>>
      %153 = tpu.memref_squeeze %152 : memref<1x128xf32, #tpu.memory_space<any>> -> memref<128xf32, #tpu.memory_space<any>>
      %c0_i32_87 = arith.constant 0 : i32
      %154 = tpu.memref_slice %arg10[%c0_i32_85, %c0_i32_87] : memref<16x128xf32, #tpu.memory_space<vmem>> -> memref<1x128xf32, #tpu.memory_space<vmem>>
      %155 = tpu.memref_squeeze %154 : memref<1x128xf32, #tpu.memory_space<vmem>> -> memref<128xf32, #tpu.memory_space<vmem>>
      %156 = tpu.memref_slice %arg11[%105] : memref<2x!tpu.dma_semaphore, #tpu.memory_space<semaphore_mem>> -> memref<1x!tpu.dma_semaphore, #tpu.memory_space<semaphore_mem>>
      %157 = tpu.memref_squeeze %156 : memref<1x!tpu.dma_semaphore, #tpu.memory_space<semaphore_mem>> -> memref<!tpu.dma_semaphore, #tpu.memory_space<semaphore_mem>>
      tpu.wait_dma2 semaphore(%157 : memref<!tpu.dma_semaphore, #tpu.memory_space<semaphore_mem>>) src(%153 : memref<128xf32, #tpu.memory_space<any>>) dst(%155 : memref<128xf32, #tpu.memory_space<vmem>>)
      %c8_i32_88 = arith.constant 8 : i32
      %158 = arith.muli %arg12, %c8_i32_88 : i32
      %159 = tpu.assume_multiple %158, 8 : i32
      %c8_i32_89 = arith.constant 8 : i32
      %160 = arith.muli %105, %c8_i32_89 : i32
      %161 = tpu.assume_multiple %160, 8 : i32
      %162 = arith.index_cast %161 : i32 to index
      %c0_90 = arith.constant 0 : index
      %163 = vector.load %arg10[%162, %c0_90] : memref<16x128xf32, #tpu.memory_space<vmem>>, vector<8x128xf32>
      %164 = arith.index_cast %159 : i32 to index
      %c0_91 = arith.constant 0 : index
      %165 = vector.load %arg3[%164, %c0_91] : memref<16x1xi32, #tpu.memory_space<vmem>>, vector<8x1xi32>
      %166 = tpu.iota {dimensions = array<i32: 1>} : vector<8x16xi32>
      %167 = vector.broadcast %165 : vector<8x1xi32> to vector<8x16xi32>
      %168 = arith.cmpi eq, %167, %166 : vector<8x16xi32>
      %169 = arith.extui %168 : vector<8x16xi1> to vector<8x16xi32>
      %170 = arith.sitofp %169 : vector<8x16xi32> to vector<8x16xf32>
      %cst = arith.constant dense<0.000000e+00> : vector<8x128xf32>
      %171 = tpu.matmul %170, %93, %cst {dimension_numbers = #tpu.dot_dimension_numbers<[1], [0], [0], [1], [0, 0, 1, 1], [], []>, precision = #tpu.contract_precision<fp32>} : vector<8x16xf32>, vector<16x128xf32>, vector<8x128xf32> -> vector<8x128xf32>
      %172 = arith.addf %163, %171 : vector<8x128xf32>
      %173 = arith.index_cast %159 : i32 to index
      %c0_92 = arith.constant 0 : index
      %174 = vector.load %arg4[%173, %c0_92] : memref<16x1xi32, #tpu.memory_space<vmem>>, vector<8x1xi32>
      %c0_i32_93 = arith.constant 0 : i32
      %175 = vector.broadcast %c0_i32_93 : i32 to vector<8x1xi32>
      %176 = arith.cmpi eq, %174, %175 : vector<8x1xi32>
      %cst_94 = arith.constant 1.000000e+00 : f32
      %cst_95 = arith.constant 0.000000e+00 : f32
      %177 = vector.broadcast %cst_94 : f32 to vector<8x1xf32>
      %178 = vector.broadcast %cst_95 : f32 to vector<8x1xf32>
      %179 = arith.select %176, %177, %178 : vector<8x1xi1>, vector<8x1xf32>
      %180 = vector.extract_strided_slice %94 {offsets = [0, 0], sizes = [1, 128], strides = [1, 1]} : vector<2x128xf32> to vector<1x128xf32>
      %181 = vector.shape_cast %180 : vector<1x128xf32> to vector<128xf32>
      %182 = vector.shape_cast %181 : vector<128xf32> to vector<1x128xf32>
      %183 = vector.broadcast %179 : vector<8x1xf32> to vector<8x128xf32>
      %184 = vector.broadcast %182 : vector<1x128xf32> to vector<8x128xf32>
      %185 = arith.mulf %183, %184 : vector<8x128xf32>
      %186 = arith.addf %172, %185 : vector<8x128xf32>
      %c1_i32_96 = arith.constant 1 : i32
      %187 = vector.broadcast %c1_i32_96 : i32 to vector<8x1xi32>
      %188 = arith.cmpi eq, %174, %187 : vector<8x1xi32>
      %cst_97 = arith.constant 1.000000e+00 : f32
      %cst_98 = arith.constant 0.000000e+00 : f32
      %189 = vector.broadcast %cst_97 : f32 to vector<8x1xf32>
      %190 = vector.broadcast %cst_98 : f32 to vector<8x1xf32>
      %191 = arith.select %188, %189, %190 : vector<8x1xi1>, vector<8x1xf32>
      %192 = vector.extract_strided_slice %94 {offsets = [1, 0], sizes = [1, 128], strides = [1, 1]} : vector<2x128xf32> to vector<1x128xf32>
      %193 = vector.shape_cast %192 : vector<1x128xf32> to vector<128xf32>
      %194 = vector.shape_cast %193 : vector<128xf32> to vector<1x128xf32>
      %195 = vector.broadcast %191 : vector<8x1xf32> to vector<8x128xf32>
      %196 = vector.broadcast %194 : vector<1x128xf32> to vector<8x128xf32>
      %197 = arith.mulf %195, %196 : vector<8x128xf32>
      %198 = arith.addf %186, %197 : vector<8x128xf32>
      %cst_99 = arith.constant dense<0.000000e+00> : vector<8xf32>
      %199 = vector.multi_reduction <add>, %198, %cst_99 [1] : vector<8x128xf32> to vector<8xf32>
      %200 = vector.shape_cast %199 : vector<8xf32> to vector<8x1xf32>
      %cst_100 = arith.constant 1.280000e+02 : f32
      %201 = vector.broadcast %cst_100 : f32 to vector<8x1xf32>
      %202 = arith.divf %200, %201 : vector<8x1xf32>
      %203 = vector.broadcast %202 : vector<8x1xf32> to vector<8x128xf32>
      %204 = arith.subf %198, %203 : vector<8x128xf32>
      %205 = arith.mulf %204, %204 : vector<8x128xf32>
      %cst_101 = arith.constant dense<0.000000e+00> : vector<8xf32>
      %206 = vector.multi_reduction <add>, %205, %cst_101 [1] : vector<8x128xf32> to vector<8xf32>
      %207 = vector.shape_cast %206 : vector<8xf32> to vector<8x1xf32>
      %cst_102 = arith.constant 1.280000e+02 : f32
      %208 = vector.broadcast %cst_102 : f32 to vector<8x1xf32>
      %209 = arith.divf %207, %208 : vector<8x1xf32>
      %cst_103 = arith.constant 9.99999996E-13 : f32
      %210 = vector.broadcast %cst_103 : f32 to vector<8x1xf32>
      %211 = arith.addf %209, %210 : vector<8x1xf32>
      %212 = math.rsqrt %211 : vector<8x1xf32>
      %213 = vector.broadcast %212 : vector<8x1xf32> to vector<8x128xf32>
      %214 = arith.mulf %204, %213 : vector<8x128xf32>
      %215 = vector.broadcast %91 : vector<1x128xf32> to vector<8x128xf32>
      %216 = arith.mulf %214, %215 : vector<8x128xf32>
      %217 = vector.broadcast %92 : vector<1x128xf32> to vector<8x128xf32>
      %218 = arith.addf %216, %217 : vector<8x128xf32>
      %219 = arith.index_cast %159 : i32 to index
      %c0_104 = arith.constant 0 : index
      %220 = vector.load %arg9[%219, %c0_104] : memref<16x128xf32, #tpu.memory_space<vmem>>, vector<8x128xf32>
      tpu.vector_store %arg9[%219, %c0_104], %218 {strides = array<i32>} : memref<16x128xf32, #tpu.memory_space<vmem>>, vector<8x128xf32>,
    }
    %c2_i32_45 = arith.constant 2 : i32
    return
  }
  func.func @transform_1(%arg0: i32, %arg1: memref<32xi32, #tpu.memory_space<smem>>) -> (i32, i32) {
    %c0_i32 = arith.constant 0 : i32
    %c0_i32_0 = arith.constant 0 : i32
    return %arg0, %c0_i32 : i32, i32
  }
  func.func @transform_2(%arg0: i32, %arg1: memref<32xi32, #tpu.memory_space<smem>>) -> (i32, i32) {
    %c0_i32 = arith.constant 0 : i32
    %c0_i32_0 = arith.constant 0 : i32
    return %arg0, %c0_i32 : i32, i32
  }
  func.func @transform_3(%arg0: i32, %arg1: memref<32xi32, #tpu.memory_space<smem>>) -> (i32, i32) {
    %c0_i32 = arith.constant 0 : i32
    %c0_i32_0 = arith.constant 0 : i32
    %c0_i32_1 = arith.constant 0 : i32
    return %c0_i32, %c0_i32_0 : i32, i32
  }
  func.func @transform_4(%arg0: i32, %arg1: memref<32xi32, #tpu.memory_space<smem>>) -> (i32, i32) {
    %c0_i32 = arith.constant 0 : i32
    %c0_i32_0 = arith.constant 0 : i32
    %c0_i32_1 = arith.constant 0 : i32
    return %c0_i32, %c0_i32_0 : i32, i32
  }
  func.func @transform_5(%arg0: i32, %arg1: memref<32xi32, #tpu.memory_space<smem>>) -> (i32, i32) {
    %c0_i32 = arith.constant 0 : i32
    %c0_i32_0 = arith.constant 0 : i32
    %c0_i32_1 = arith.constant 0 : i32
    return %c0_i32, %c0_i32_0 : i32, i32
  }
  func.func @transform_6(%arg0: i32, %arg1: memref<32xi32, #tpu.memory_space<smem>>) -> (i32, i32) {
    %c0_i32 = arith.constant 0 : i32
    %c0_i32_0 = arith.constant 0 : i32
    %c0_i32_1 = arith.constant 0 : i32
    return %c0_i32, %c0_i32_0 : i32, i32
  }
  func.func @transform_7(%arg0: i32, %arg1: memref<32xi32, #tpu.memory_space<smem>>) -> (i32, i32) {
    %c0_i32 = arith.constant 0 : i32
    %c0_i32_0 = arith.constant 0 : i32
    return %arg0, %c0_i32 : i32, i32
  }
}

</mosaic_0001>

<bundles_post_ra>
// kernel: tpu_custom_call.1
= control target key start
LH: loop header
LB: loop body
LE: loop exit
PB: predicated region body
PF: predicated region fallthrough
CT: control target
= control target key end

     0   :  { %s2594_s0 = inlined_call_operand.vmem [shape: s32[32], index: 0, kind: input, shape index: {}]   ;;  %s2595_s1 = inlined_call_operand.vmem [shape: f32[64,128], index: 1, kind: input, shape index: {}]   ;;  %s2596_s2 = inlined_call_operand.vmem [shape: s32[32,1], index: 2, kind: input, shape index: {}]   ;;  %s2597_s3 = inlined_call_operand.vmem [shape: s32[32,1], index: 3, kind: input, shape index: {}]   ;;  %s2598_s4 = inlined_call_operand.vmem [shape: f32[16,128], index: 4, kind: input, shape index: {}]   ;;  %s2599_s5 = inlined_call_operand.vmem [shape: f32[2,128], index: 5, kind: input, shape index: {}]   ;;  %s2600_s6 = inlined_call_operand.vmem [shape: f32[1,128], index: 6, kind: input, shape index: {}]   ;;  %s2601_s7 = inlined_call_operand.vmem [shape: f32[1,128], index: 7, kind: input, shape index: {}]   ;;  %s2602_s8 = inlined_call_operand.hbm [shape: f32[32,128], index: 8, kind: output, shape index: {}]  }
   0x1   :  { %2608 = sst [smem:[#allocation30_spill]] %s2596_s2  ;;  %s13_s29 = sshll.u32 %s2594_s0, 4  ;;  %s14_s29 = int_to_ptr.vmem [resolvable:$true] %s13_s29 }
   0x2   :  { %2609 = sst [smem:[#allocation31_spill]] %s2597_s3  ;;  %s2160_s30 = scalar_lea.vmem %s14_s29, 16 }
   0x3   :  { %2610 = sst [smem:[#allocation32_spill]] %s2598_s4  ;;  %p2161_p0 = scmp.ne.s32.totalorder %s14_s29, %s2160_s30 }
   0x4   :  { %2611 = sst [smem:[#allocation33_spill]] %s2599_s5  ;;  %p2165_p1 = scmp.lt.s32.totalorder %s14_s29, %s14_s29 }
   0x5   :  { %p2166_p2 = scmp.lt.s32.totalorder %s2160_s30, %s2160_s30 }
   0x7   :  { %p2167_p3 = por %p2166_p2, %p2165_p1 }
   0x9   :  { %p2168_p4 = pnand %p2167_p3, %p2161_p0 }
   0xb   :  { %2171 = shalt.err (!%p2168_p4)  }
   0xc   :  { %s2248_s9 = smov [#allocation5]  }
   0xd   :  { %16 = dma.vmem_to_smem %s14_s29, 16, %s2248_s9, [#allocation4] }
   0xe   :  { %2220 = dma.done.wait [#allocation4], 16 }
   0xf   :  { %2221 = vsyncadd [#allocation4], 4294967280 }
  0x10   :  { %18 = sfence }
  0x11   :  { %19 = vsyncpa [#allocation7], 0 }
  0x12   :  { %21 = vsyncpa [#allocation7 + $0x1], 0  ;;  %s2304_s10 = smov 0   ;;  %s2306_s11 = smov 0  }
  0x13   :  { %s2308_s0 = smov 0   ;;  %s2310_s12 = smov 0  }
  0x14 LB: > { %2612 = sst [smem:[#allocation27_spill]] %s2238_s0  ;;  %s2325_s13 = sadd.s32 4294967295, %s2242_s12   ;;  %s2242_s12 = sphi %s2310_s12, %s2626_s12   ;;  %s2238_s0 = sphi %s2308_s0, %s2628_s0   ;;  %s2234_s11 = sphi %s2306_s11, %s2630_s11   ;;  %s2230_s10 = sphi %s2304_s10, %s2629_s10  }
  0x15   : > { %s1969_s14 = sadd.s32 4294967294, %s2242_s12   ;;  %s2329_s15 = sadd.s32 1, %s2242_s12  }
  0x16   : > { %2613 = sst [smem:[#allocation28_spill]] %s2329_s15  ;;  %s170_s16 = sadd.s32 1, %s2238_s0 }
  0x17   : > { %s167_s17 = ssub.s32 %s2242_s12, %s2329_s15  ;;  %p180_p5 = scmp.ne.s32.totalorder %s2238_s0, %s2234_s11 }
  0x18   : > { %p168_p6 = scmp.eq.s32.totalorder %s167_s17, 0  ;;  %p181_p7 = scmp.eq.s32.totalorder %s2325_s13, 1 }
  0x19   : > { %p186_p8 = scmp.ne.s32.totalorder %s2234_s11, %s2230_s10  ;;  %p187_p9 = scmp.eq.s32.totalorder %s1969_s14, 1 }
  0x1a   : > { %s2340_s18 = scalar_select %p168_p6, %s2238_s0, %s170_s16  }
  0x1b   : > { %p2342_p10 = por %p181_p7, %p180_p5  ;;  %p2346_p11 = por %p187_p9, %p186_p8 }
  0x1c   : > { %2614 = sst [smem:[#allocation29_spill]] %s2340_s18  ;;  %p1972_p12 = scmp.ge.s32.totalorder %s2242_s12, 1 }
  0x1d   : > { %p235_p13 = scmp.lt.s32.totalorder %s2242_s12, 3 }
  0x1f   : > { %p236_p0 = pnand %p1972_p12, %p235_p13 }
  0x20   : > { %s2603_s21 = sand.u32 (!%p236_p0), 1, %s2234_s11   ;;  %s1974_s22 = sshll.u32 (!%p236_p0), %s2325_s13, 1 }
  0x21   : > { %239 = sbr.rel (%p236_p0) target bundleno = 910 (0x38e), region = 44  ;;  %s2356_s23 = sshll.u32 (!%p236_p0), %s2603_s21, 4 }
  0x22   : > { %p271_p1 = scmp.lt.s32.totalorder (!%p236_p0), %s1974_s22, 3  ;;  %s2359_s24 = sshll.u32 (!%p236_p0), %s2325_s13, 4 }
  0x23   : > { %s284_s25 = sld [smem:[#allocation5 + %s2359_s24]] (!%p236_p0) }
  0x24   : > { %s2617_s2 = sld [smem:[#allocation30_spill]] (!%p236_p0)  ;;  %s2618_s3 = sld [smem:[#allocation31_spill]] (!%p236_p0) }
  0x28   : > { %s2632_s22 = smov (!%p271_p1, %s1974_s22), 3 }
  0x29   : > { %s1975_s26 = sshll.u32 %s2632_s22, 3  ;;  %s285_s21 = scalar_lea.vmem %s2595_s1, %s284_s25 }
  0x2a   : > { %s2365_s29 = scalar_lea.vmem %s2617_s2, %s1975_s26  ;;  %s2370_s14 = scalar_lea.vmem %s2618_s3, %s1975_s26  ;;  %v303_v0 = vld [vmem:[%s285_s21] sm:$0x1] }
  0x2b   : > { %304 = vst [vmem:[#allocation2] sm:$0x1] %v303_v0 }
  0x2c   : > { %329 = vsyncadd [#allocation3], 16  ;;  %s330_s22 = sadd.s32 1, %s2359_s24 }
  0x2d   : > { %s331_s0 = sld [smem:[#allocation5 + %s330_s22]] }
  0x33   : > { %s332_s28 = scalar_lea.vmem %s2595_s1, %s331_s0 }
  0x34   : > { %v351_v1 = vld [vmem:[%s332_s28] sm:$0x1] }
  0x35   : > { %352 = vst [vmem:[#allocation2 + $0x1] sm:$0x1] %v351_v1 }
  0x36   : > { %377 = vsyncadd [#allocation3], 16  ;;  %s378_s26 = sadd.s32 2, %s2359_s24 }
  0x37   : > { %s379_s30 = sld [smem:[#allocation5 + %s378_s26]] }
  0x3d   : > { %s380_s21 = scalar_lea.vmem %s2595_s1, %s379_s30 }
  0x3e   : > { %v399_v2 = vld [vmem:[%s380_s21] sm:$0x1] }
  0x3f   : > { %400 = vst [vmem:[#allocation2 + $0x2] sm:$0x1] %v399_v2 }
  0x40   : > { %425 = vsyncadd [#allocation3], 16  ;;  %s426_s25 = sadd.s32 3, %s2359_s24 }
  0x41   : > { %s427_s17 = sld [smem:[#allocation5 + %s426_s25]] }
  0x47   : > { %s428_s0 = scalar_lea.vmem %s2595_s1, %s427_s17 }
  0x48   : > { %v447_v3 = vld [vmem:[%s428_s0] sm:$0x1] }
  0x49   : > { %448 = vst [vmem:[#allocation2 + $0x3] sm:$0x1] %v447_v3 }
  0x4a   : > { %473 = vsyncadd [#allocation3], 16  ;;  %s474_s15 = sadd.s32 4, %s2359_s24 }
  0x4b   : > { %s475_s27 = sld [smem:[#allocation5 + %s474_s15]] }
  0x51   : > { %s476_s30 = scalar_lea.vmem %s2595_s1, %s475_s27 }
  0x52   : > { %v495_v4 = vld [vmem:[%s476_s30] sm:$0x1] }
  0x53   : > { %496 = vst [vmem:[#allocation2 + $0x4] sm:$0x1] %v495_v4 }
  0x54   : > { %521 = vsyncadd [#allocation3], 16  ;;  %s522_s9 = sadd.s32 5, %s2359_s24 }
  0x55   : > { %s523_s16 = sld [smem:[#allocation5 + %s522_s9]] }
  0x5b   : > { %s524_s18 = scalar_lea.vmem %s2595_s1, %s523_s16 }
  0x5c   : > { %v543_v5 = vld [vmem:[%s524_s18] sm:$0x1] }
  0x5d   : > { %544 = vst [vmem:[#allocation2 + $0x5] sm:$0x1] %v543_v5 }
  0x5e   : > { %569 = vsyncadd [#allocation3], 16  ;;  %s570_s17 = sadd.s32 6, %s2359_s24 }
  0x5f   : > { %s571_s22 = sld [smem:[#allocation5 + %s570_s17]] }
  0x65   : > { %s572_s27 = scalar_lea.vmem %s2595_s1, %s571_s22 }
  0x66   : > { %v591_v6 = vld [vmem:[%s572_s27] sm:$0x1] }
  0x67   : > { %592 = vst [vmem:[#allocation2 + $0x6] sm:$0x1] %v591_v6 }
  0x68   : > { %617 = vsyncadd [#allocation3], 16  ;;  %s618_s28 = sadd.s32 7, %s2359_s24 }
  0x69   : > { %s619_s26 = sld [smem:[#allocation5 + %s618_s28]] }
  0x6f   : > { %s620_s16 = scalar_lea.vmem %s2595_s1, %s619_s26 }
  0x70   : > { %v639_v7 = vld [vmem:[%s620_s16] sm:$0x1] }
  0x71   : > { %640 = vst [vmem:[#allocation2 + $0x7] sm:$0x1] %v639_v7 }
  0x72   : > { %665 = vsyncadd [#allocation3], 16  ;;  %v2407_v8 = vld [vmem:[%s2600_s6] ss:$0 sm:$0xff]  ;;  %s2619_s4 = sld [smem:[#allocation32_spill]]  ;;  %s2620_s5 = sld [smem:[#allocation33_spill]] }
  0x73   : > { %v2412_v9 = vld [vmem:[%s2601_s7] ss:$0 sm:$0xff]  ;;  %s2429_s30 = smov 0  }
  0x78   : > { %v2417_v10 = vld [vmem:[%s2619_s4] sm:$0xff]  ;;  %v2422_v11 = vld [vmem:[%s2619_s4 + $0x8] sm:$0xff] }
  0x79   : > { %v2427_v12 = vld [vmem:[%s2620_s5] sm:$0x3] }
  0x7a LB: >> { %p677_p2 = scmp.lt.s32.totalorder %s2246_s30, 0  ;;  %s678_s9 = ssub.s32 0, %s2246_s30  ;;  %s2246_s30 = sphi %s2429_s30, %s2623_s30  }
  0x7b   : >> { %s1979_s16 = smin.u32 %s2246_s30, %s678_s9  ;;  %s2607_s21 = sadd.s32 1, %s2246_s30  }
  0x7c   : >> { %s680_s25 = sand.u32 1, %s1979_s16   ;;  %p2442_p4 = scmp.ge.s32.totalorder %s2607_s21, 2 }
  0x7d   : >> { %s681_s18 = ssub.s32 0, %s680_s25  ;;  %s2021_s0 = sshll.u32 (!%p2442_p4), %s2246_s30, 3 }
  0x7e   : >> { %s2634_s18 = smov (!%p677_p2, %s681_s18), %s680_s25  ;;  %693 = sbr.rel (%p2442_p4) target bundleno = 210 (0xd2), region = 295 }
  0x7f   : >> { %p1981_p3 = scmp.lt.s32.totalorder %s2634_s18, 0  ;;  %s687_s17 = sadd.s32 2, %s2634_s18 }
  0x80   : >> { %s2022_s15 = sadd.s32 (!%p2442_p4), 8, %s2021_s0 }
  0x81   : >> { %s2636_s17 = smov (!%p1981_p3, %s687_s17), %s2634_s18  ;;  %s2451_s28 = sadd.s32 (!%p2442_p4), %s2022_s15, %s2359_s24 }
  0x82   : >> { %s694_s27 = ssub.s32 (!%p2442_p4), 1, %s2636_s17  ;;  %s698_s26 = sld [smem:[#allocation5 + %s2451_s28]] (!%p2442_p4) }
  0x83   : >> { %s1984_s9 = sshll.u32 (!%p2442_p4), %s694_s27, 3  ;;  %s2460_s2 = scalar_lea.sflag (!%p2442_p4), [#allocation3], %s694_s27 }
  0x84   : >> { %s2457_s21 = scalar_lea.vmem (!%p2442_p4), [#allocation2], %s1984_s9 }
  0x88   : >> { %s699_s18 = scalar_lea.vmem %s2595_s1, %s698_s26 }
  0x89   : >> { %v719_v13 = vld [vmem:[%s699_s18] sm:$0x1] }
  0x8a   : >> { %720 = vst [vmem:[%s2457_s21] sm:$0x1] %v719_v13 }
  0x8b   : >> { %745 = vsyncadd %s2460_s2, 16  ;;  %s746_s0 = sadd.s32 1, %s2451_s28 }
  0x8c   : >> { %s747_s15 = sld [smem:[#allocation5 + %s746_s0]] }
  0x92   : >> { %s749_s5 = scalar_lea.vmem %s2595_s1, %s747_s15 }
  0x93   : >> { %v768_v14 = vld [vmem:[%s749_s5] sm:$0x1] }
  0x94   : >> { %1987 = vst [vmem:[%s2457_s21 + $0x1] sm:$0x1] %v768_v14 }
  0x95   : >> { %794 = vsyncadd %s2460_s2, 16  ;;  %s795_s26 = sadd.s32 2, %s2451_s28 }
  0x96   : >> { %s796_s27 = sld [smem:[#allocation5 + %s795_s26]] }
  0x9c   : >> { %s798_s25 = scalar_lea.vmem %s2595_s1, %s796_s27 }
  0x9d   : >> { %v817_v15 = vld [vmem:[%s798_s25] sm:$0x1] }
  0x9e   : >> { %1990 = vst [vmem:[%s2457_s21 + $0x2] sm:$0x1] %v817_v15 }
  0x9f   : >> { %843 = vsyncadd %s2460_s2, 16  ;;  %s844_s3 = sadd.s32 3, %s2451_s28 }
  0xa0   : >> { %s845_s4 = sld [smem:[#allocation5 + %s844_s3]] }
  0xa6   : >> { %s847_s0 = scalar_lea.vmem %s2595_s1, %s845_s4 }
  0xa7   : >> { %v866_v16 = vld [vmem:[%s847_s0] sm:$0x1] }
  0xa8   : >> { %1993 = vst [vmem:[%s2457_s21 + $0x3] sm:$0x1] %v866_v16 }
  0xa9   : >> { %892 = vsyncadd %s2460_s2, 16  ;;  %s893_s15 = sadd.s32 4, %s2451_s28 }
  0xaa   : >> { %s894_s26 = sld [smem:[#allocation5 + %s893_s15]] }
  0xb0   : >> { %s896_s16 = scalar_lea.vmem %s2595_s1, %s894_s26 }
  0xb1   : >> { %v915_v17 = vld [vmem:[%s896_s16] sm:$0x1] }
  0xb2   : >> { %1996 = vst [vmem:[%s2457_s21 + $0x4] sm:$0x1] %v915_v17 }
  0xb3   : >> { %941 = vsyncadd %s2460_s2, 16  ;;  %s942_s25 = sadd.s32 5, %s2451_s28 }
  0xb4   : >> { %s943_s3 = sld [smem:[#allocation5 + %s942_s25]] }
  0xba   : >> { %s945_s18 = scalar_lea.vmem %s2595_s1, %s943_s3 }
  0xbb   : >> { %v964_v18 = vld [vmem:[%s945_s18] sm:$0x1] }
  0xbc   : >> { %1999 = vst [vmem:[%s2457_s21 + $0x5] sm:$0x1] %v964_v18 }
  0xbd   : >> { %990 = vsyncadd %s2460_s2, 16  ;;  %s991_s0 = sadd.s32 6, %s2451_s28 }
  0xbe   : >> { %s992_s15 = sld [smem:[#allocation5 + %s991_s0]] }
  0xc4   : >> { %s994_s9 = scalar_lea.vmem %s2595_s1, %s992_s15 }
  0xc5   : >> { %v1013_v19 = vld [vmem:[%s994_s9] sm:$0x1] }
  0xc6   : >> { %2002 = vst [vmem:[%s2457_s21 + $0x6] sm:$0x1] %v1013_v19 }
  0xc7   : >> { %1039 = vsyncadd %s2460_s2, 16  ;;  %s1040_s16 = sadd.s32 7, %s2451_s28 }
  0xc8   : >> { %s1041_s25 = sld [smem:[#allocation5 + %s1040_s16]] }
  0xce   : >> { %s1043_s5 = scalar_lea.vmem %s2595_s1, %s1041_s25 }
  0xcf   : >> { %v1062_v20 = vld [vmem:[%s1043_s5] sm:$0x1] }
  0xd0   : >> { %2005 = vst [vmem:[%s2457_s21 + $0x7] sm:$0x1] %v1062_v20 }
  0xd1   : >> { %1088 = vsyncadd %s2460_s2, 16 }
  0xd2 PF: >> { %s1089_s18 = scalar_lea.sflag [#allocation3], %s2636_s17 }
  0xd3   : >> { %2222 = dma.done.wait %s1089_s18, 128 }
  0xd4   : >> { %2223 = vsyncadd %s1089_s18, 4294967168  ;;  %v1125_v21 = vand.u32 4294901760, %v2417_v10  ;;  %v2249_v22 = vmov 0   ;;  %s2508_s28 = sshll.u32 %s2246_s30, 3  ;;  %v2250_v23 = vmov 0.0|0.0   ;;  %v1128_v24 = vand.u32 4294901760, %v2422_v11 }
  0xd5   : >> { %2156 = vset.pattern.permute.xlu0 %v2249_v22  ;;  %2087 = vmatprep.subr.bf16.mxu1 %v2250_v23  ;;  %s1110_s2 = scalar_lea.vmem %s2365_s29, %s2508_s28  ;;  %s1584_s21 = scalar_lea.vmem %s2370_s14, %s2508_s28  ;;  %v2251_v34 = vmov 0.0   ;;  %vm2252_vm1 = vmmov 0   ;;  %v1112_v42 = vlaneseq  ;;  %vm1120_vm3 = vcmask 130048  }
  0xd6   : >> { %v1203_v25 = vsub.f32 %v2417_v10, %v1125_v21  ;;  %2084 = vmatprep.subr.bf16.mxu0 %v2250_v23  ;;  %2157 = vset.pattern.permute.xlu1 %v2249_v22  ;;  %v1210_v26 = vsub.f32 %v2422_v11, %v1128_v24  ;;  %v1111_v30 = vld [vmem:[%s1110_s2] sm:$0xff]  ;;  %v2085_v37 = vpack.c.bf16 %v1128_v24, %v1125_v21  ;;  %s2007_s0 = sshll.u32 %s2636_s17, 3  ;;  %s2622_s17 = scalar_lea.vmem [#allocation6], %s2356_s23 }
  0xd7   : >> { %v1585_v31 = vld [vmem:[%s1584_s21] sm:$0xff]  ;;  %1115 = vperm.xlu0 %2156, %v1111_v30   ;;  %2053 = vmatprep.mubr.msk.f32.mxu1 %vm2252_vm1, %v2251_v34  ;;  %v1113_v43 = vand.u32 127, %v1112_v42  ;;  %v1594_v57 = vshrl.u32 %v1112_v42, 7  ;;  %s1108_s15 = scalar_lea.vmem [#allocation2], %s2007_s0  ;;  %s1638_s26 = scalar_lea.vmem %s2622_s17, %s2508_s28 [#allocation6] }
  0xd8   : >> { %v1204_v27 = vand.u32 4294901760, %v1203_v25  ;;  %v1211_v28 = vand.u32 4294901760, %v1210_v26  ;;  %vm1586_vm0 = vcmp.eq.s32.totalorder %v1585_v31, 0  ;;  %2046 = vmatprep.mubr.msk.f32.mxu0 %vm2252_vm1, %v2251_v34  ;;  %2086 = vmatpush3.bf16.msra.mxu0 %v2085_v37  ;;  %v2091_v39 = vpack.c.bf16 %v1210_v26, %v1203_v25  ;;  %v1109_v14 = vld [vmem:[%s1108_s15] sm:$0xff]  ;;  %s2623_s30 = sadd.s32 1, %s2246_s30   ;;  %s2023_s27 = sshll.u32 (%p2442_p4), %s2325_s13, 8 }
  0xd9   : >> { %v1587_v35 = vsel %vm1586_vm0, 1.0, %v2251_v34  ;;  %2090 = vmatprep.subr.bf16.mxu0 %v2250_v23  ;;  %vm1599_vm2 = vcmp.eq.s32.totalorder %v1585_v31, 1  ;;  %v1595_v62 = vsub.s32 0, %v1594_v57  ;;  %v1608_v1 = vsub.s32 1, %v1594_v57  ;;  %s2545_s25 = scalar_lea.hbm (%p2442_p4), %s2602_s8, %s2023_s27  ;;  %s2624_s3 = scalar_lea.vmem (%p2442_p4), [#allocation6], %s2356_s23 }
  0xda   : >> { %v1205_v29 = vsub.f32 %v1203_v25, %v1204_v27  ;;  %v1212_v32 = vsub.f32 %v1210_v26, %v1211_v28  ;;  %v2097_v40 = vpack.c.bf16 %v1211_v28, %v1204_v27  ;;  %v1600_v41 = vsel %vm1599_vm2, 1.0, %v2251_v34  ;;  %s1654_s4 = sshll.u32 (%p2442_p4), %s2624_s3, 4  ;;  %s2625_s5 = sand.u32 (%p2442_p4), 1, %s2234_s11   ;;  %s2549_s4 = int_to_ptr.vmem [resolvable:$true] %s1654_s4 }
  0xdb   : >> { %1590 = vperm.xlu0 %2156, %v1587_v35   ;;  %1603 = vperm.xlu1 %2157, %v1600_v41   ;;  %v1596_v4 = vrot.slane %v2427_v12, %v1595_v62  ;;  %v1609_v7 = vrot.slane %v2427_v12, %v1608_v1  ;;  %s2553_s30 = scalar_lea.sflag (%p2442_p4), [#allocation7], %s2625_s5  ;;  %s2172_s24 = scalar_lea.vmem (%p2442_p4), %s2549_s4, 256 }
  0xdc   : >> { %v1206_v33 = vand.u32 4294901760, %v1205_v29  ;;  %v1213_v36 = vand.u32 4294901760, %v1212_v32  ;;  %p2173_p5 = scmp.ne.s32.totalorder (%p2442_p4), %s2549_s4, %s2172_s24  ;;  %s2253_s13 = smov (%p2442_p4), [#allocation6]  }
  0xdd   : > { %s2176_s29 = sshll.u32 (%p2442_p4), %s2253_s13, 4  ;;  %s2177_s29 = int_to_ptr.vmem [resolvable:$false] %s2176_s29 }
  0xde   : >> { %v2088_v38 = vpack.c.bf16 %v1213_v36, %v1206_v33  ;;  %p2174_p6 = pnand (%p2442_p4), %p2173_p5, %p2342_p10  ;;  %s2178_s14 = scalar_lea.vmem (%p2442_p4), %s2177_s29, 512 }
  0xdf   : > { %p2179_p8 = scmp.lt.s32.totalorder (%p2442_p4), %s2549_s4, %s2177_s29  ;;  %p2180_p9 = scmp.lt.s32.totalorder (%p2442_p4), %s2178_s14, %s2172_s24 }
  0xe0   : >> { %2089 = vmatpush3.bf16.msra.mxu1 %v2088_v38  ;;  %p2175_p7 = pneg (%p2442_p4), %p2174_p6 }
  0xe1   : >> { %2093 = vmatprep.subr.bf16.mxu1 %v2250_v23  ;;  %p2181_p12 = por (%p2442_p4), %p2180_p9, %p2179_p8 }
  0xe3   : > { %p2182_p13 = pnand (%p2442_p4), %p2181_p12, %p2175_p7 }
 0x156   : >> { %v1116_v44 = vpop.permute.xlu0 %1115 }
 0x157   : >> { %vm1117_vm4 = vcmp.eq.s32.totalorder %v1116_v44, %v1113_v43 }
 0x158   : >> { %v2008_v45 = vsel %vm1117_vm4, 1.0, %v2251_v34 }
 0x159   : >> { %v1122_v46 = vsel %vm1120_vm3, %v2008_v45, 0  ;;  %2054 = vmatmul.mubr.msk.f32.vlgmr.msra.gmra.mrb[0].mxu1 %vm1120_vm3, %v2008_v45 }
 0x15a   : >> { %v1192_v47 = vsub.f32 %v1122_v46, %v1122_v46  ;;  %2095 = vmatpush3.bf16.msra.mxu1 %v2085_v37  ;;  %2067 = vmatprep.mubr.msk.f32.mxu1 %vm2252_vm1, %v2251_v34  ;;  %v1591_v13 = vpop.permute.xlu0 %1590  ;;  %v1604_v15 = vpop.permute.xlu1 %1603 }
 0x15b   : >> { %2099 = vmatprep.subr.bf16.mxu1 %v2250_v23  ;;  %v1597_v17 = vmul.f32 %v1596_v4, %v1591_v13  ;;  %v1610_v19 = vmul.f32 %v1609_v7, %v1604_v15 }
 0x15c   : >> { %v1193_v48 = vand.u32 4294901760, %v1192_v47 }
 0x15e   : >> { %2068 = vmatmul.mubr.f32.vlgmr.msra.gmra.mrb[2].mxu1 %v1193_v48  ;;  %v1194_v49 = vsub.f32 %v1192_v47, %v1193_v48 }
 0x15f   : >> { %2101 = vmatpush3.bf16.msra.mxu1 %v2085_v37  ;;  %2081 = vmatprep.mubr.msk.f32.mxu1 %vm2252_vm1, %v2251_v34 }
 0x160   : >> { %v1195_v50 = vand.u32 4294901760, %v1194_v49 }
 0x162   : >> { %2047 = vmatmul.mubr.f32.vlgmr.msra.gmra.mrb[0].mxu0 %v1195_v50  ;;  %2082 = vmatmul.mubr.msk.f32.vlgmr.msra.gmra.mrb[4].mxu1 %vm1120_vm3, %v2008_v45 }
 0x163   : >> { %2092 = vmatpush3.bf16.msra.mxu0 %v2091_v39  ;;  %2060 = vmatprep.mubr.msk.f32.mxu0 %vm2252_vm1, %v2251_v34 }
 0x164   : >> { %2096 = vmatprep.subr.bf16.mxu0 %v2250_v23 }
 0x166   : >> { %2061 = vmatmul.mubr.f32.vlgmr.msra.gmra.mrb[2].mxu0 %v1192_v47 }
 0x167   : >> { %2098 = vmatpush3.bf16.msra.mxu0 %v2097_v40  ;;  %2074 = vmatprep.mubr.msk.f32.mxu0 %vm2252_vm1, %v2251_v34 }
 0x16a   : >> { %2075 = vmatmul.mubr.msk.f32.vlgmr.msra.gmra.mrb[4].mxu0 %vm1120_vm3, %v2008_v45 }
 0x22c   : >> { %v1278_v51 = vpop.f32.mrb[0].mxu1 }
 0x22d   : >> { %v2055_v52 = vpop.f32.mrb[1].mxu1 }
 0x231   : >> { %v1429_v53 = vpop.f32.mrb[2].mxu1 }
 0x232   : >> { %v2069_v54 = vpop.f32.mrb[3].mxu1 }
 0x235   : >> { %v1197_v55 = vpop.f32.mrb[0].mxu0  ;;  %v1579_v56 = vpop.f32.mrb[4].mxu1 }
 0x236   : >> { %v1279_v58 = vadd.f32 %v1278_v51, %v1197_v55  ;;  %v2048_v59 = vpop.f32.mrb[1].mxu0  ;;  %v2083_v60 = vpop.f32.mrb[5].mxu1 }
 0x239   : >> { %v1354_v61 = vpop.f32.mrb[2].mxu0 }
 0x23a   : >> { %v1355_v63 = vadd.f32 %v1354_v61, %v1279_v58  ;;  %v2062_v0 = vpop.f32.mrb[3].mxu0 }
 0x23c   : >> { %v1430_v2 = vadd.f32 %v1429_v53, %v1355_v63 }
 0x23d   : >> { %v1506_v3 = vpop.f32.mrb[4].mxu0 }
 0x23e   : >> { %v1507_v5 = vadd.f32 %v1506_v3, %v1430_v2  ;;  %v2076_v6 = vpop.f32.mrb[5].mxu0 }
 0x240   : >> { %v1580_v16 = vadd.f32 %v1579_v56, %v1507_v5 }
 0x242   : >> { %v1583_v18 = vadd.f32 %v1580_v16, %v1109_v14 }
 0x244   : >> { %v1598_v20 = vadd.f32 %v1597_v17, %v1583_v18 }
 0x246   : >> { %v1611_v21 = vadd.f32 %v1610_v19, %v1598_v20 }
 0x248   : >> { %1612 = vadd.xlane.f32.xlu1 %v1611_v21 }
 0x2d5   : >> { %v1613_v22 = vpop.xlane.xlu1 %1612 }
 0x2d6   : >> { %v1615_v23 = vmul.f32 0.0078125, %v1613_v22 }
 0x2d8   : >> { %v1616_v24 = vsub.f32 %v1611_v21, %v1615_v23 }
 0x2da   : >> { %v1617_v25 = vmul.f32 %v1616_v24, %v1616_v24 }
 0x2dc   : >> { %1618 = vadd.xlane.f32.xlu0 %v1617_v25 }
 0x369   : >> { %v1619_v26 = vpop.xlane.xlu0 %1618 }
 0x36a   : >> { %v1620_v27 = vmul.f32 0.0078125, %v1619_v26 }
 0x36c   : >> { %v1621_v28 = vadd.f32 1e-12, %v1620_v27 }
 0x36e   : >> { %2158 = vrsqrt.f32 %v1621_v28 }
 0x378   : >> { %v2159_v29 = vpop.eup %2158 }
 0x379   : >> { %v1623_v30 = vmul.f32 %v2159_v29, %v1616_v24  ;;  %675 = sbr.rel (!%p2442_p4) target bundleno = 122 (0x7a), region = 771 }
 0x37b   : >> { %v1630_v31 = vmul.f32 %v2407_v8, %v1623_v30 }
 0x37d   : >> { %v1637_v32 = vadd.f32 %v2412_v9, %v1630_v31 }
 0x37f   : >> { %1639 = vst [vmem:[%s1638_s26] sm:$0xff] %v1637_v32 }
 0x380   : > { %2185 = shalt.err (!%p2182_p13)
}
 0x381   : > { %s2186_s23 = scalar_lea.hbm %s2545_s25, 256  ;;  %s2190_s28 = scalar_lea.hbm %s2602_s8, 512 }
 0x382   : > { %p2187_p0 = scmp.ne.s32.totalorder %s2545_s25, %s2186_s23  ;;  %p2191_p3 = scmp.lt.u32.totalorder %s2545_s25, %s2602_s8 }
 0x383   : > { %p2192_p4 = scmp.lt.u32.totalorder %s2190_s28, %s2186_s23  ;;  %p2194_p6 = scmp.lt.u32.totalorder %s2186_s23, %s2545_s25 }
 0x384   : > { %p2188_p1 = pnand %p2187_p0, %p2342_p10 }
 0x385   : > { %p2193_p5 = por %p2192_p4, %p2191_p3 }
 0x386   : > { %p2189_p2 = pneg %p2188_p1 }
 0x387   : > { %p2195_p7 = por %p2194_p6, %p2193_p5 }
 0x389   : > { %p2196_p8 = pnand %p2195_p7, %p2189_p2 }
 0x38b   : > { %2199 = shalt.err (!%p2196_p8)
}
 0x38c   : > { %s2254_s0 = smov 128   ;;  %s2255_s15 = smov 8  }
 0x38d   : > { %2102 = dma.vmem_to_hbm [thread:$0]  (%p2342_p10), %s2549_s4, 256, %s2545_s25, %s2553_s30, %s2254_s0, %s2254_s0, %s2255_s15  }
 0x38e PF: > { %p2108_p9 = scmp.ge.s32.totalorder %s2242_s12, 2  ;;  %s1669_s17 = sand.u32 1, %s2230_s10  }
 0x38f   : > { %s1670_s26 = scalar_lea.sflag [#allocation7], %s1669_s17 }
 0x390   : > { %p2105_p12 = pnand %p2108_p9, %p2346_p11 }
 0x392   : > { %2225 = dma.done.wait (!%p2105_p12), %s1670_s26, 256  }
 0x393   : > { %2227 = vsyncadd (!%p2105_p12), %s1670_s26, 4294967040  ;;  %s2626_s12 = sld [smem:[#allocation28_spill]]  ;;  %s2627_s27 = sld [smem:[#allocation27_spill]] }
 0x394   : > { %s2628_s0 = sld [smem:[#allocation29_spill]]  ;;  %s2629_s10 = smov %s2234_s11 }
 0x399   : > { %p24_p13 = scmp.ge.s32.totalorder %s2626_s12, 4   ;;  %s2630_s11 = smov %s2627_s27 }
 0x39b   :  { %26 = sbr.rel (!%p24_p13) target bundleno = 20 (0x14), region = 782 }
 0x3a2   :  { %1675 = vsyncpa [#allocation7], 1 }
 0x3a3   :  { %1677 = vsyncpa [#allocation7 + $0x1], 1 }
 0x3a4   :  { %1678 = vsyncmov [#allocation3] }
 0x3a7   :  { %s1679_s19 = vpop.sfrf %1678 }
 0x3a8   :  { %p2019_p10 = scmp.ne.s32.totalorder %s1679_s19, 0 }
 0x3aa   :  { %1683 = shalt.err (%p2019_p10)  }
 0x3ab   :  { %1685 = vsyncmov [#allocation3 + $0x1] }
 0x3ae   :  { %s1686_s20 = vpop.sfrf %1685 }
 0x3af   :  { %p2020_p11 = scmp.ne.s32.totalorder %s1686_s20, 0 }
 0x3b1   :  { %1690 = shalt.err (%p2020_p11)  }

</bundles_post_ra>
